<compile_context>
chip_gen: v7x
topology: tpu7x:2x2x1
jax: 0.10.0
libtpu: 0.0.40
codegen_flags: <defaults>
</compile_context>

<pallas_src>
import math

import jax
import jax.numpy as jnp
from jax.experimental import pallas as pl
from jax.experimental.pallas import tpu as pltpu

# ---------------- model config (small, self-consistent) ----------------
B = 2              # batch
S = 8              # sequence length
VOCAB = 100        # vocab size
H = 32             # hidden_dim
NUM_HEADS = 2
HEAD_DIM = H // NUM_HEADS
FFN = 64           # intermediate size
L = 2              # number of encoder layers
OUT = 2            # output_dim of the classifier
OUT_PAD = 128      # lane-dense padded classifier width (sliced to OUT in wrapper)
LN_EPS = 1e-5
N = B * S          # rows processed per matmul


# ---------------- in-kernel helpers ----------------
def _layer_norm(x, gamma, beta):
    # x: (N, H) f32, gamma/beta: (1, H)
    mean = jnp.mean(x, axis=-1, keepdims=True)
    var = jnp.mean((x - mean) ** 2, axis=-1, keepdims=True)
    inv = jax.lax.rsqrt(var + LN_EPS)
    return (x - mean) * inv * gamma + beta


# ---------------- fused forward kernel ----------------
def fused_forward_kernel(emb_ref, bias_ref, embln_ref,
                         wqkv_ref, wo_ref, wf1_ref, wf2_ref,
                         bqkv_ref, bh_ref, bf1_ref,
                         fcw_ref, fcb_ref, out_ref):
    # embedding LayerNorm on the whole (B*S, H) slab
    h = emb_ref[...].astype(jnp.float32)                      # (N, H)
    h = _layer_norm(h, embln_ref[0], embln_ref[1])

    # additive key mask, shared by every layer and head: (B, S, S)
    bias = bias_ref[...]

    for li in range(L):                                       # static unroll (L small)
        # ---------------- multi-head self-attention ----------------
        attn_out = jnp.zeros((N, H), jnp.float32)
        for hd in range(NUM_HEADS):                           # static; no lane slicing
            iq = (li * 3 + 0) * NUM_HEADS + hd
            ik = (li * 3 + 1) * NUM_HEADS + hd
            iv = (li * 3 + 2) * NUM_HEADS + hd
            # NOTE: 1/sqrt(HEAD_DIM) is pre-folded into Wq/bq host-side.
            q = jnp.dot(h, wqkv_ref[iq], preferred_element_type=jnp.float32) + bqkv_ref[iq]
            k = jnp.dot(h, wqkv_ref[ik], preferred_element_type=jnp.float32) + bqkv_ref[ik]
            v = jnp.dot(h, wqkv_ref[iv], preferred_element_type=jnp.float32) + bqkv_ref[iv]
            q3 = q.reshape(B, S, HEAD_DIM)                    # leading-dim split only
            k3 = k.reshape(B, S, HEAD_DIM)
            v3 = v.reshape(B, S, HEAD_DIM)
            scores = jnp.einsum('bqd,bkd->bqk', q3, k3,
                                preferred_element_type=jnp.float32) + bias
            m = jnp.max(scores, axis=-1, keepdims=True)
            e = jnp.exp(scores - m)
            p = e * pl.reciprocal(jnp.sum(e, axis=-1, keepdims=True), approx=True)
            ctx = jnp.einsum('bqk,bkd->bqd', p, v3,
                             preferred_element_type=jnp.float32)      # (B, S, HD)
            # accumulate ctx_h @ Wo[h]  (row-sliced Wo packed host-side -> no concat)
            attn_out = attn_out + jnp.dot(ctx.reshape(N, HEAD_DIM),
                                          wo_ref[li * NUM_HEADS + hd],
                                          preferred_element_type=jnp.float32)
        attn_out = attn_out + bh_ref[li * 6 + 0]                       # bo
        h1 = _layer_norm(h + attn_out, bh_ref[li * 6 + 1], bh_ref[li * 6 + 2])

        # ---------------- feed-forward ----------------
        ff = jnp.dot(h1, wf1_ref[li], preferred_element_type=jnp.float32) + bf1_ref[li]
        # NOTE: tanh-approx GELU (HF Roberta default is exact erf GELU;
        # acceptable mismatch for this synthetic encoder).
        ff = jax.nn.gelu(ff)
        ff = jnp.dot(ff, wf2_ref[li], preferred_element_type=jnp.float32) + bh_ref[li * 6 + 3]
        h = _layer_norm(h1 + ff, bh_ref[li * 6 + 4], bh_ref[li * 6 + 5])

    # ---------------- classifier + sigmoid (lane-dense (N, 128) store) ----------------
    # Classifier is applied to all N rows (negligible extra MACs) so the store is
    # fully dense; CLS-row selection + un-padding happens in the JAX wrapper.
    logits = jnp.dot(h, fcw_ref[...], preferred_element_type=jnp.float32) + fcb_ref[...]
    out_ref[...] = jax.nn.sigmoid(logits).astype(out_ref.dtype)


# ---------------- pallas wrapper ----------------
_VMEM_SPEC = pl.BlockSpec(memory_space=pltpu.MemorySpace.VMEM)


def fused_forward_pallas(emb2d, bias, params):
    return pl.pallas_call(
        fused_forward_kernel,
        out_shape=jax.ShapeDtypeStruct((N, OUT_PAD), jnp.float32),
        in_specs=[_VMEM_SPEC] * 12,
        out_specs=_VMEM_SPEC,
    )(emb2d, bias, params["emb_ln"],
      params["w_qkv"], params["w_o"], params["w_f1"], params["w_f2"],
      params["b_qkv"], params["b_h"], params["b_f1"],
      params["fc_w_pad"], params["fc_b_pad"])


# ---------------- parameter init (deterministic, synthetic, pre-packed) ----------------
def init_params(key):
    ks = jax.random.split(key, 8)

    def dense(k, shape):
        return jax.random.normal(k, shape, jnp.float32) * 0.02

    # per-layer (1, H) rows in fixed order: [bo, ln1_gamma, ln1_beta, b2, ln2_gamma, ln2_beta]
    ln_rows = jnp.stack([
        jnp.zeros((1, H), jnp.float32),   # bo
        jnp.ones((1, H), jnp.float32),    # ln1 gamma
        jnp.zeros((1, H), jnp.float32),   # ln1 beta
        jnp.zeros((1, H), jnp.float32),   # b2
        jnp.ones((1, H), jnp.float32),    # ln2 gamma
        jnp.zeros((1, H), jnp.float32),   # ln2 beta
    ])                                    # (6, 1, H)

    fc_w = dense(ks[6], (H, OUT))
    fc_w_pad = jnp.zeros((H, OUT_PAD), jnp.float32).at[:, :OUT].set(fc_w)

    # Q/K/V weights pre-split per head: index = (layer*3 + {q,k,v}) * NH + head.
    # Fold the attention scale 1/sqrt(HEAD_DIM) into the Q slots (kind == 0) so
    # the kernel never multiplies the score tensor.
    w_qkv = dense(ks[2], (L * 3 * NUM_HEADS, H, HEAD_DIM))
    b_qkv = jnp.zeros((L * 3 * NUM_HEADS, 1, HEAD_DIM), jnp.float32)
    qkv_kind = (jnp.arange(L * 3 * NUM_HEADS) // NUM_HEADS) % 3     # 0=q, 1=k, 2=v
    scale_vec = jnp.where(qkv_kind == 0, 1.0 / math.sqrt(HEAD_DIM), 1.0).astype(jnp.float32)
    w_qkv = w_qkv * scale_vec[:, None, None]
    b_qkv = b_qkv * scale_vec[:, None, None]

    return {
        "word_emb": dense(ks[0], (VOCAB, H)),
        "pos_emb": dense(ks[1], (S, H)),
        # stacked [gamma; beta] for the embedding LayerNorm
        "emb_ln": jnp.stack([jnp.ones((1, H), jnp.float32),
                             jnp.zeros((1, H), jnp.float32)]),              # (2, 1, H)
        "w_qkv": w_qkv,                                                     # (L*3*NH, H, HD)
        # output projection pre-split along its rows per head: index = layer*NH + head
        "w_o": dense(ks[3], (L * NUM_HEADS, HEAD_DIM, H)),
        "w_f1": dense(ks[4], (L, H, FFN)),
        "w_f2": dense(ks[5], (L, FFN, H)),
        "b_qkv": b_qkv,                                                     # (L*3*NH, 1, HD)
        "b_h": jnp.tile(ln_rows, (L, 1, 1)),                                # (L*6, 1, H)
        "b_f1": jnp.zeros((L, 1, FFN), jnp.float32),
        "fc_w_pad": fc_w_pad,                                               # (H, 128)
        "fc_b_pad": jnp.zeros((1, OUT_PAD), jnp.float32),
    }


# ---------------- full forward (mirrors UniXcoderClassifier.forward) ----------------
@jax.jit
def unixcoder_classifier_forward(x, params):
    # x: (B, 2, S) int32 -> x[:,0,:] input_ids, x[:,1,:] attention_mask
    input_ids = x[:, 0, :]
    attn_mask = x[:, 1, :].astype(jnp.float32)

    # plain-JAX glue: data-dependent embedding gather, flattened to (B*S, H)
    # (no RoBERTa padding_idx position offset -- synthetic encoder)
    emb = jnp.take(params["word_emb"], input_ids, axis=0) + params["pos_emb"][None, :, :]
    emb2d = emb.reshape(N, H)

    # additive key-mask bias, computed once for all layers/heads: (B, S, S)
    bias = jnp.broadcast_to(((1.0 - attn_mask) * -1e9)[:, None, :], (B, S, S))

    out_all = fused_forward_pallas(emb2d, bias, params)        # (B*S, OUT_PAD)
    # CLS pooling + un-pad in the wrapper (cheap layout glue)
    return out_all.reshape(B, S, OUT_PAD)[:, 0, :OUT]          # (B, OUT) sigmoid probs


if __name__ == "__main__":
    key = jax.random.PRNGKey(0)
    k_param, k_ids = jax.random.split(key)

    params = init_params(k_param)

    # x = stacked [input_ids, attention_mask] of shape (B, 2, S)
    input_ids = jax.random.randint(k_ids, (B, S), 0, VOCAB, dtype=jnp.int32)
    attention_mask = jnp.array(
        [[1, 1, 1, 1, 1, 1, 1, 1],
         [1, 1, 1, 1, 1, 0, 0, 0]], dtype=jnp.int32)
    x = jnp.stack([input_ids, attention_mask], axis=1)          # (B, 2, S)

    out = unixcoder_classifier_forward(x, params)
    jax.block_until_ready(out)
    assert out.shape == (B, OUT)
    assert bool(jnp.all((out >= 0.0) & (out <= 1.0)))
    print("KERNEL_OK")
</pallas_src>

<mosaic_0001>
module attributes {stable_mosaic.version = 11 : i64} {
  func.func @fused_forward_kernel(%arg0: memref<16x32xf32, #tpu.memory_space<vmem>>, %arg1: memref<2x8x8xf32, #tpu.memory_space<vmem>>, %arg2: memref<2x1x32xf32, #tpu.memory_space<vmem>>, %arg3: memref<12x32x16xf32, #tpu.memory_space<vmem>>, %arg4: memref<4x16x32xf32, #tpu.memory_space<vmem>>, %arg5: memref<2x32x64xf32, #tpu.memory_space<vmem>>, %arg6: memref<2x64x32xf32, #tpu.memory_space<vmem>>, %arg7: memref<12x1x16xf32, #tpu.memory_space<vmem>>, %arg8: memref<12x1x32xf32, #tpu.memory_space<vmem>>, %arg9: memref<2x1x64xf32, #tpu.memory_space<vmem>>, %arg10: memref<32x128xf32, #tpu.memory_space<vmem>>, %arg11: memref<1x128xf32, #tpu.memory_space<vmem>>, %arg12: memref<16x128xf32, #tpu.memory_space<vmem>>) attributes {dimension_semantics = [], scalar_prefetch = 0 : i64, scratch_operands = 0 : i64, tpu.core_type = #tpu.core_type<tc>} {
    %c0 = arith.constant 0 : index
    %c0_0 = arith.constant 0 : index
    %0 = vector.load %arg0[%c0, %c0_0] : memref<16x32xf32, #tpu.memory_space<vmem>>, vector<16x32xf32>
    %c0_1 = arith.constant 0 : index
    %c0_2 = arith.constant 0 : index
    %c0_3 = arith.constant 0 : index
    %1 = vector.load %arg2[%c0_1, %c0_2, %c0_3] : memref<2x1x32xf32, #tpu.memory_space<vmem>>, vector<1x1x32xf32>
    %2 = vector.shape_cast %1 : vector<1x1x32xf32> to vector<1x32xf32>
    %c1 = arith.constant 1 : index
    %c0_4 = arith.constant 0 : index
    %c0_5 = arith.constant 0 : index
    %3 = vector.load %arg2[%c1, %c0_4, %c0_5] : memref<2x1x32xf32, #tpu.memory_space<vmem>>, vector<1x1x32xf32>
    %4 = vector.shape_cast %3 : vector<1x1x32xf32> to vector<1x32xf32>
    %cst = arith.constant dense<0.000000e+00> : vector<16xf32>
    %5 = vector.multi_reduction <add>, %0, %cst [1] : vector<16x32xf32> to vector<16xf32>
    %6 = vector.shape_cast %5 : vector<16xf32> to vector<16x1xf32>
    %cst_6 = arith.constant 3.200000e+01 : f32
    %7 = vector.broadcast %cst_6 : f32 to vector<16x1xf32>
    %8 = arith.divf %6, %7 : vector<16x1xf32>
    %9 = vector.broadcast %8 : vector<16x1xf32> to vector<16x32xf32>
    %10 = arith.subf %0, %9 : vector<16x32xf32>
    %11 = arith.mulf %10, %10 : vector<16x32xf32>
    %cst_7 = arith.constant dense<0.000000e+00> : vector<16xf32>
    %12 = vector.multi_reduction <add>, %11, %cst_7 [1] : vector<16x32xf32> to vector<16xf32>
    %13 = vector.shape_cast %12 : vector<16xf32> to vector<16x1xf32>
    %cst_8 = arith.constant 3.200000e+01 : f32
    %14 = vector.broadcast %cst_8 : f32 to vector<16x1xf32>
    %15 = arith.divf %13, %14 : vector<16x1xf32>
    %cst_9 = arith.constant 9.99999974E-6 : f32
    %16 = vector.broadcast %cst_9 : f32 to vector<16x1xf32>
    %17 = arith.addf %15, %16 : vector<16x1xf32>
    %18 = math.rsqrt %17 : vector<16x1xf32>
    %19 = vector.broadcast %8 : vector<16x1xf32> to vector<16x32xf32>
    %20 = arith.subf %0, %19 : vector<16x32xf32>
    %21 = vector.broadcast %18 : vector<16x1xf32> to vector<16x32xf32>
    %22 = arith.mulf %20, %21 : vector<16x32xf32>
    %23 = vector.broadcast %2 : vector<1x32xf32> to vector<16x32xf32>
    %24 = arith.mulf %22, %23 : vector<16x32xf32>
    %25 = vector.broadcast %4 : vector<1x32xf32> to vector<16x32xf32>
    %26 = arith.addf %24, %25 : vector<16x32xf32>
    %c0_10 = arith.constant 0 : index
    %c0_11 = arith.constant 0 : index
    %c0_12 = arith.constant 0 : index
    %27 = vector.load %arg1[%c0_10, %c0_11, %c0_12] : memref<2x8x8xf32, #tpu.memory_space<vmem>>, vector<2x8x8xf32>
    %cst_13 = arith.constant 0.000000e+00 : f32
    %28 = vector.broadcast %cst_13 : f32 to vector<16x32xf32>
    %c0_14 = arith.constant 0 : index
    %c0_15 = arith.constant 0 : index
    %c0_16 = arith.constant 0 : index
    %29 = vector.load %arg3[%c0_14, %c0_15, %c0_16] : memref<12x32x16xf32, #tpu.memory_space<vmem>>, vector<1x32x16xf32>
    %30 = vector.shape_cast %29 : vector<1x32x16xf32> to vector<32x16xf32>
    %cst_17 = arith.constant dense<0.000000e+00> : vector<16x16xf32>
    %31 = tpu.matmul %26, %30, %cst_17 {dimension_numbers = #tpu.dot_dimension_numbers<[1], [0], [0], [1], [0, 0, 1, 1], [], []>} : vector<16x32xf32>, vector<32x16xf32>, vector<16x16xf32> -> vector<16x16xf32>
    %c0_18 = arith.constant 0 : index
    %c0_19 = arith.constant 0 : index
    %c0_20 = arith.constant 0 : index
    %32 = vector.load %arg7[%c0_18, %c0_19, %c0_20] : memref<12x1x16xf32, #tpu.memory_space<vmem>>, vector<1x1x16xf32>
    %33 = vector.shape_cast %32 : vector<1x1x16xf32> to vector<1x16xf32>
    %34 = vector.broadcast %33 : vector<1x16xf32> to vector<16x16xf32>
    %35 = arith.addf %31, %34 : vector<16x16xf32>
    %c2 = arith.constant 2 : index
    %c0_21 = arith.constant 0 : index
    %c0_22 = arith.constant 0 : index
    %36 = vector.load %arg3[%c2, %c0_21, %c0_22] : memref<12x32x16xf32, #tpu.memory_space<vmem>>, vector<1x32x16xf32>
    %37 = vector.shape_cast %36 : vector<1x32x16xf32> to vector<32x16xf32>
    %cst_23 = arith.constant dense<0.000000e+00> : vector<16x16xf32>
    %38 = tpu.matmul %26, %37, %cst_23 {dimension_numbers = #tpu.dot_dimension_numbers<[1], [0], [0], [1], [0, 0, 1, 1], [], []>} : vector<16x32xf32>, vector<32x16xf32>, vector<16x16xf32> -> vector<16x16xf32>
    %c2_24 = arith.constant 2 : index
    %c0_25 = arith.constant 0 : index
    %c0_26 = arith.constant 0 : index
    %39 = vector.load %arg7[%c2_24, %c0_25, %c0_26] : memref<12x1x16xf32, #tpu.memory_space<vmem>>, vector<1x1x16xf32>
    %40 = vector.shape_cast %39 : vector<1x1x16xf32> to vector<1x16xf32>
    %41 = vector.broadcast %40 : vector<1x16xf32> to vector<16x16xf32>
    %42 = arith.addf %38, %41 : vector<16x16xf32>
    %c4 = arith.constant 4 : index
    %c0_27 = arith.constant 0 : index
    %c0_28 = arith.constant 0 : index
    %43 = vector.load %arg3[%c4, %c0_27, %c0_28] : memref<12x32x16xf32, #tpu.memory_space<vmem>>, vector<1x32x16xf32>
    %44 = vector.shape_cast %43 : vector<1x32x16xf32> to vector<32x16xf32>
    %cst_29 = arith.constant dense<0.000000e+00> : vector<16x16xf32>
    %45 = tpu.matmul %26, %44, %cst_29 {dimension_numbers = #tpu.dot_dimension_numbers<[1], [0], [0], [1], [0, 0, 1, 1], [], []>} : vector<16x32xf32>, vector<32x16xf32>, vector<16x16xf32> -> vector<16x16xf32>
    %c4_30 = arith.constant 4 : index
    %c0_31 = arith.constant 0 : index
    %c0_32 = arith.constant 0 : index
    %46 = vector.load %arg7[%c4_30, %c0_31, %c0_32] : memref<12x1x16xf32, #tpu.memory_space<vmem>>, vector<1x1x16xf32>
    %47 = vector.shape_cast %46 : vector<1x1x16xf32> to vector<1x16xf32>
    %48 = vector.broadcast %47 : vector<1x16xf32> to vector<16x16xf32>
    %49 = arith.addf %45, %48 : vector<16x16xf32>
    %50 = vector.shape_cast %35 : vector<16x16xf32> to vector<2x8x16xf32>
    %51 = vector.shape_cast %42 : vector<16x16xf32> to vector<2x8x16xf32>
    %52 = vector.shape_cast %49 : vector<16x16xf32> to vector<2x8x16xf32>
    "tpu.trace_start"() <{level = 10 : i32, message = "bqd,bkd->bqk"}> : () -> ()
    %cst_33 = arith.constant dense<0.000000e+00> : vector<2x8x8xf32>
    %53 = tpu.matmul %50, %51, %cst_33 {dimension_numbers = #tpu.dot_dimension_numbers<[2], [2], [1], [1], [0, 0, 0, 1, 1, 1], [0], [0]>} : vector<2x8x16xf32>, vector<2x8x16xf32>, vector<2x8x8xf32> -> vector<2x8x8xf32>
    "tpu.trace_stop"() : () -> ()
    %54 = arith.addf %53, %27 : vector<2x8x8xf32>
    %cst_34 = arith.constant dense<0xFF800000> : vector<2x8xf32>
    %55 = vector.multi_reduction <maximumf>, %54, %cst_34 [2] : vector<2x8x8xf32> to vector<2x8xf32>
    %56 = vector.shape_cast %55 : vector<2x8xf32> to vector<2x8x1xf32>
    %57 = vector.broadcast %56 : vector<2x8x1xf32> to vector<2x8x8xf32>
    %58 = arith.subf %54, %57 : vector<2x8x8xf32>
    %59 = math.exp %58 : vector<2x8x8xf32>
    %cst_35 = arith.constant dense<0.000000e+00> : vector<2x8xf32>
    %60 = vector.multi_reduction <add>, %59, %cst_35 [2] : vector<2x8x8xf32> to vector<2x8xf32>
    %61 = vector.shape_cast %60 : vector<2x8xf32> to vector<2x8x1xf32>
    %62 = tpu.reciprocal %61 {approx = true} : vector<2x8x1xf32> -> vector<2x8x1xf32>
    %63 = vector.broadcast %62 : vector<2x8x1xf32> to vector<2x8x8xf32>
    %64 = arith.mulf %59, %63 : vector<2x8x8xf32>
    "tpu.trace_start"() <{level = 10 : i32, message = "bqk,bkd->bqd"}> : () -> ()
    %cst_36 = arith.constant dense<0.000000e+00> : vector<2x8x16xf32>
    %65 = tpu.matmul %64, %52, %cst_36 {dimension_numbers = #tpu.dot_dimension_numbers<[2], [1], [1], [2], [0, 0, 0, 1, 1, 2], [0], [0]>} : vector<2x8x8xf32>, vector<2x8x16xf32>, vector<2x8x16xf32> -> vector<2x8x16xf32>
    "tpu.trace_stop"() : () -> ()
    %66 = vector.shape_cast %65 : vector<2x8x16xf32> to vector<16x16xf32>
    %c0_37 = arith.constant 0 : index
    %c0_38 = arith.constant 0 : index
    %c0_39 = arith.constant 0 : index
    %67 = vector.load %arg4[%c0_37, %c0_38, %c0_39] : memref<4x16x32xf32, #tpu.memory_space<vmem>>, vector<1x16x32xf32>
    %68 = vector.shape_cast %67 : vector<1x16x32xf32> to vector<16x32xf32>
    %cst_40 = arith.constant dense<0.000000e+00> : vector<16x32xf32>
    %69 = tpu.matmul %66, %68, %cst_40 {dimension_numbers = #tpu.dot_dimension_numbers<[1], [0], [0], [1], [0, 0, 1, 1], [], []>} : vector<16x16xf32>, vector<16x32xf32>, vector<16x32xf32> -> vector<16x32xf32>
    %70 = arith.addf %28, %69 : vector<16x32xf32>
    %c1_41 = arith.constant 1 : index
    %c0_42 = arith.constant 0 : index
    %c0_43 = arith.constant 0 : index
    %71 = vector.load %arg3[%c1_41, %c0_42, %c0_43] : memref<12x32x16xf32, #tpu.memory_space<vmem>>, vector<1x32x16xf32>
    %72 = vector.shape_cast %71 : vector<1x32x16xf32> to vector<32x16xf32>
    %cst_44 = arith.constant dense<0.000000e+00> : vector<16x16xf32>
    %73 = tpu.matmul %26, %72, %cst_44 {dimension_numbers = #tpu.dot_dimension_numbers<[1], [0], [0], [1], [0, 0, 1, 1], [], []>} : vector<16x32xf32>, vector<32x16xf32>, vector<16x16xf32> -> vector<16x16xf32>
    %c1_45 = arith.constant 1 : index
    %c0_46 = arith.constant 0 : index
    %c0_47 = arith.constant 0 : index
    %74 = vector.load %arg7[%c1_45, %c0_46, %c0_47] : memref<12x1x16xf32, #tpu.memory_space<vmem>>, vector<1x1x16xf32>
    %75 = vector.shape_cast %74 : vector<1x1x16xf32> to vector<1x16xf32>
    %76 = vector.broadcast %75 : vector<1x16xf32> to vector<16x16xf32>
    %77 = arith.addf %73, %76 : vector<16x16xf32>
    %c3 = arith.constant 3 : index
    %c0_48 = arith.constant 0 : index
    %c0_49 = arith.constant 0 : index
    %78 = vector.load %arg3[%c3, %c0_48, %c0_49] : memref<12x32x16xf32, #tpu.memory_space<vmem>>, vector<1x32x16xf32>
    %79 = vector.shape_cast %78 : vector<1x32x16xf32> to vector<32x16xf32>
    %cst_50 = arith.constant dense<0.000000e+00> : vector<16x16xf32>
    %80 = tpu.matmul %26, %79, %cst_50 {dimension_numbers = #tpu.dot_dimension_numbers<[1], [0], [0], [1], [0, 0, 1, 1], [], []>} : vector<16x32xf32>, vector<32x16xf32>, vector<16x16xf32> -> vector<16x16xf32>
    %c3_51 = arith.constant 3 : index
    %c0_52 = arith.constant 0 : index
    %c0_53 = arith.constant 0 : index
    %81 = vector.load %arg7[%c3_51, %c0_52, %c0_53] : memref<12x1x16xf32, #tpu.memory_space<vmem>>, vector<1x1x16xf32>
    %82 = vector.shape_cast %81 : vector<1x1x16xf32> to vector<1x16xf32>
    %83 = vector.broadcast %82 : vector<1x16xf32> to vector<16x16xf32>
    %84 = arith.addf %80, %83 : vector<16x16xf32>
    %c5 = arith.constant 5 : index
    %c0_54 = arith.constant 0 : index
    %c0_55 = arith.constant 0 : index
    %85 = vector.load %arg3[%c5, %c0_54, %c0_55] : memref<12x32x16xf32, #tpu.memory_space<vmem>>, vector<1x32x16xf32>
    %86 = vector.shape_cast %85 : vector<1x32x16xf32> to vector<32x16xf32>
    %cst_56 = arith.constant dense<0.000000e+00> : vector<16x16xf32>
    %87 = tpu.matmul %26, %86, %cst_56 {dimension_numbers = #tpu.dot_dimension_numbers<[1], [0], [0], [1], [0, 0, 1, 1], [], []>} : vector<16x32xf32>, vector<32x16xf32>, vector<16x16xf32> -> vector<16x16xf32>
    %c5_57 = arith.constant 5 : index
    %c0_58 = arith.constant 0 : index
    %c0_59 = arith.constant 0 : index
    %88 = vector.load %arg7[%c5_57, %c0_58, %c0_59] : memref<12x1x16xf32, #tpu.memory_space<vmem>>, vector<1x1x16xf32>
    %89 = vector.shape_cast %88 : vector<1x1x16xf32> to vector<1x16xf32>
    %90 = vector.broadcast %89 : vector<1x16xf32> to vector<16x16xf32>
    %91 = arith.addf %87, %90 : vector<16x16xf32>
    %92 = vector.shape_cast %77 : vector<16x16xf32> to vector<2x8x16xf32>
    %93 = vector.shape_cast %84 : vector<16x16xf32> to vector<2x8x16xf32>
    %94 = vector.shape_cast %91 : vector<16x16xf32> to vector<2x8x16xf32>
    "tpu.trace_start"() <{level = 10 : i32, message = "bqd,bkd->bqk"}> : () -> ()
    %cst_60 = arith.constant dense<0.000000e+00> : vector<2x8x8xf32>
    %95 = tpu.matmul %92, %93, %cst_60 {dimension_numbers = #tpu.dot_dimension_numbers<[2], [2], [1], [1], [0, 0, 0, 1, 1, 1], [0], [0]>} : vector<2x8x16xf32>, vector<2x8x16xf32>, vector<2x8x8xf32> -> vector<2x8x8xf32>
    "tpu.trace_stop"() : () -> ()
    %96 = arith.addf %95, %27 : vector<2x8x8xf32>
    %cst_61 = arith.constant dense<0xFF800000> : vector<2x8xf32>
    %97 = vector.multi_reduction <maximumf>, %96, %cst_61 [2] : vector<2x8x8xf32> to vector<2x8xf32>
    %98 = vector.shape_cast %97 : vector<2x8xf32> to vector<2x8x1xf32>
    %99 = vector.broadcast %98 : vector<2x8x1xf32> to vector<2x8x8xf32>
    %100 = arith.subf %96, %99 : vector<2x8x8xf32>
    %101 = math.exp %100 : vector<2x8x8xf32>
    %cst_62 = arith.constant dense<0.000000e+00> : vector<2x8xf32>
    %102 = vector.multi_reduction <add>, %101, %cst_62 [2] : vector<2x8x8xf32> to vector<2x8xf32>
    %103 = vector.shape_cast %102 : vector<2x8xf32> to vector<2x8x1xf32>
    %104 = tpu.reciprocal %103 {approx = true} : vector<2x8x1xf32> -> vector<2x8x1xf32>
    %105 = vector.broadcast %104 : vector<2x8x1xf32> to vector<2x8x8xf32>
    %106 = arith.mulf %101, %105 : vector<2x8x8xf32>
    "tpu.trace_start"() <{level = 10 : i32, message = "bqk,bkd->bqd"}> : () -> ()
    %cst_63 = arith.constant dense<0.000000e+00> : vector<2x8x16xf32>
    %107 = tpu.matmul %106, %94, %cst_63 {dimension_numbers = #tpu.dot_dimension_numbers<[2], [1], [1], [2], [0, 0, 0, 1, 1, 2], [0], [0]>} : vector<2x8x8xf32>, vector<2x8x16xf32>, vector<2x8x16xf32> -> vector<2x8x16xf32>
    "tpu.trace_stop"() : () -> ()
    %108 = vector.shape_cast %107 : vector<2x8x16xf32> to vector<16x16xf32>
    %c1_64 = arith.constant 1 : index
    %c0_65 = arith.constant 0 : index
    %c0_66 = arith.constant 0 : index
    %109 = vector.load %arg4[%c1_64, %c0_65, %c0_66] : memref<4x16x32xf32, #tpu.memory_space<vmem>>, vector<1x16x32xf32>
    %110 = vector.shape_cast %109 : vector<1x16x32xf32> to vector<16x32xf32>
    %cst_67 = arith.constant dense<0.000000e+00> : vector<16x32xf32>
    %111 = tpu.matmul %108, %110, %cst_67 {dimension_numbers = #tpu.dot_dimension_numbers<[1], [0], [0], [1], [0, 0, 1, 1], [], []>} : vector<16x16xf32>, vector<16x32xf32>, vector<16x32xf32> -> vector<16x32xf32>
    %112 = arith.addf %70, %111 : vector<16x32xf32>
    %c0_68 = arith.constant 0 : index
    %c0_69 = arith.constant 0 : index
    %c0_70 = arith.constant 0 : index
    %113 = vector.load %arg8[%c0_68, %c0_69, %c0_70] : memref<12x1x32xf32, #tpu.memory_space<vmem>>, vector<1x1x32xf32>
    %114 = vector.shape_cast %113 : vector<1x1x32xf32> to vector<1x32xf32>
    %115 = vector.broadcast %114 : vector<1x32xf32> to vector<16x32xf32>
    %116 = arith.addf %112, %115 : vector<16x32xf32>
    %117 = arith.addf %26, %116 : vector<16x32xf32>
    %c1_71 = arith.constant 1 : index
    %c0_72 = arith.constant 0 : index
    %c0_73 = arith.constant 0 : index
    %118 = vector.load %arg8[%c1_71, %c0_72, %c0_73] : memref<12x1x32xf32, #tpu.memory_space<vmem>>, vector<1x1x32xf32>
    %119 = vector.shape_cast %118 : vector<1x1x32xf32> to vector<1x32xf32>
    %c2_74 = arith.constant 2 : index
    %c0_75 = arith.constant 0 : index
    %c0_76 = arith.constant 0 : index
    %120 = vector.load %arg8[%c2_74, %c0_75, %c0_76] : memref<12x1x32xf32, #tpu.memory_space<vmem>>, vector<1x1x32xf32>
    %121 = vector.shape_cast %120 : vector<1x1x32xf32> to vector<1x32xf32>
    %cst_77 = arith.constant dense<0.000000e+00> : vector<16xf32>
    %122 = vector.multi_reduction <add>, %117, %cst_77 [1] : vector<16x32xf32> to vector<16xf32>
    %123 = vector.shape_cast %122 : vector<16xf32> to vector<16x1xf32>
    %cst_78 = arith.constant 3.200000e+01 : f32
    %124 = vector.broadcast %cst_78 : f32 to vector<16x1xf32>
    %125 = arith.divf %123, %124 : vector<16x1xf32>
    %126 = vector.broadcast %125 : vector<16x1xf32> to vector<16x32xf32>
    %127 = arith.subf %117, %126 : vector<16x32xf32>
    %128 = arith.mulf %127, %127 : vector<16x32xf32>
    %cst_79 = arith.constant dense<0.000000e+00> : vector<16xf32>
    %129 = vector.multi_reduction <add>, %128, %cst_79 [1] : vector<16x32xf32> to vector<16xf32>
    %130 = vector.shape_cast %129 : vector<16xf32> to vector<16x1xf32>
    %cst_80 = arith.constant 3.200000e+01 : f32
    %131 = vector.broadcast %cst_80 : f32 to vector<16x1xf32>
    %132 = arith.divf %130, %131 : vector<16x1xf32>
    %cst_81 = arith.constant 9.99999974E-6 : f32
    %133 = vector.broadcast %cst_81 : f32 to vector<16x1xf32>
    %134 = arith.addf %132, %133 : vector<16x1xf32>
    %135 = math.rsqrt %134 : vector<16x1xf32>
    %136 = vector.broadcast %125 : vector<16x1xf32> to vector<16x32xf32>
    %137 = arith.subf %117, %136 : vector<16x32xf32>
    %138 = vector.broadcast %135 : vector<16x1xf32> to vector<16x32xf32>
    %139 = arith.mulf %137, %138 : vector<16x32xf32>
    %140 = vector.broadcast %119 : vector<1x32xf32> to vector<16x32xf32>
    %141 = arith.mulf %139, %140 : vector<16x32xf32>
    %142 = vector.broadcast %121 : vector<1x32xf32> to vector<16x32xf32>
    %143 = arith.addf %141, %142 : vector<16x32xf32>
    %c0_82 = arith.constant 0 : index
    %c0_83 = arith.constant 0 : index
    %c0_84 = arith.constant 0 : index
    %144 = vector.load %arg5[%c0_82, %c0_83, %c0_84] : memref<2x32x64xf32, #tpu.memory_space<vmem>>, vector<1x32x64xf32>
    %145 = vector.shape_cast %144 : vector<1x32x64xf32> to vector<32x64xf32>
    %cst_85 = arith.constant dense<0.000000e+00> : vector<16x64xf32>
    %146 = tpu.matmul %143, %145, %cst_85 {dimension_numbers = #tpu.dot_dimension_numbers<[1], [0], [0], [1], [0, 0, 1, 1], [], []>} : vector<16x32xf32>, vector<32x64xf32>, vector<16x64xf32> -> vector<16x64xf32>
    %c0_86 = arith.constant 0 : index
    %c0_87 = arith.constant 0 : index
    %c0_88 = arith.constant 0 : index
    %147 = vector.load %arg9[%c0_86, %c0_87, %c0_88] : memref<2x1x64xf32, #tpu.memory_space<vmem>>, vector<1x1x64xf32>
    %148 = vector.shape_cast %147 : vector<1x1x64xf32> to vector<1x64xf32>
    %149 = vector.broadcast %148 : vector<1x64xf32> to vector<16x64xf32>
    %150 = arith.addf %146, %149 : vector<16x64xf32>
    %151 = arith.mulf %150, %150 : vector<16x64xf32>
    %152 = arith.mulf %150, %151 : vector<16x64xf32>
    %cst_89 = arith.constant 4.471500e-02 : f32
    %153 = vector.broadcast %cst_89 : f32 to vector<16x64xf32>
    %154 = arith.mulf %153, %152 : vector<16x64xf32>
    %155 = arith.addf %150, %154 : vector<16x64xf32>
    %cst_90 = arith.constant 0.797884583 : f32
    %156 = vector.broadcast %cst_90 : f32 to vector<16x64xf32>
    %157 = arith.mulf %156, %155 : vector<16x64xf32>
    %158 = math.tanh %157 : vector<16x64xf32>
    %cst_91 = arith.constant 1.000000e+00 : f32
    %159 = vector.broadcast %cst_91 : f32 to vector<16x64xf32>
    %160 = arith.addf %159, %158 : vector<16x64xf32>
    %cst_92 = arith.constant 5.000000e-01 : f32
    %161 = vector.broadcast %cst_92 : f32 to vector<16x64xf32>
    %162 = arith.mulf %161, %160 : vector<16x64xf32>
    %163 = arith.mulf %150, %162 : vector<16x64xf32>
    %c0_93 = arith.constant 0 : index
    %c0_94 = arith.constant 0 : index
    %c0_95 = arith.constant 0 : index
    %164 = vector.load %arg6[%c0_93, %c0_94, %c0_95] : memref<2x64x32xf32, #tpu.memory_space<vmem>>, vector<1x64x32xf32>
    %165 = vector.shape_cast %164 : vector<1x64x32xf32> to vector<64x32xf32>
    %cst_96 = arith.constant dense<0.000000e+00> : vector<16x32xf32>
    %166 = tpu.matmul %163, %165, %cst_96 {dimension_numbers = #tpu.dot_dimension_numbers<[1], [0], [0], [1], [0, 0, 1, 1], [], []>} : vector<16x64xf32>, vector<64x32xf32>, vector<16x32xf32> -> vector<16x32xf32>
    %c3_97 = arith.constant 3 : index
    %c0_98 = arith.constant 0 : index
    %c0_99 = arith.constant 0 : index
    %167 = vector.load %arg8[%c3_97, %c0_98, %c0_99] : memref<12x1x32xf32, #tpu.memory_space<vmem>>, vector<1x1x32xf32>
    %168 = vector.shape_cast %167 : vector<1x1x32xf32> to vector<1x32xf32>
    %169 = vector.broadcast %168 : vector<1x32xf32> to vector<16x32xf32>
    %170 = arith.addf %166, %169 : vector<16x32xf32>
    %171 = arith.addf %143, %170 : vector<16x32xf32>
    %c4_100 = arith.constant 4 : index
    %c0_101 = arith.constant 0 : index
    %c0_102 = arith.constant 0 : index
    %172 = vector.load %arg8[%c4_100, %c0_101, %c0_102] : memref<12x1x32xf32, #tpu.memory_space<vmem>>, vector<1x1x32xf32>
    %173 = vector.shape_cast %172 : vector<1x1x32xf32> to vector<1x32xf32>
    %c5_103 = arith.constant 5 : index
    %c0_104 = arith.constant 0 : index
    %c0_105 = arith.constant 0 : index
    %174 = vector.load %arg8[%c5_103, %c0_104, %c0_105] : memref<12x1x32xf32, #tpu.memory_space<vmem>>, vector<1x1x32xf32>
    %175 = vector.shape_cast %174 : vector<1x1x32xf32> to vector<1x32xf32>
    %cst_106 = arith.constant dense<0.000000e+00> : vector<16xf32>
    %176 = vector.multi_reduction <add>, %171, %cst_106 [1] : vector<16x32xf32> to vector<16xf32>
    %177 = vector.shape_cast %176 : vector<16xf32> to vector<16x1xf32>
    %cst_107 = arith.constant 3.200000e+01 : f32
    %178 = vector.broadcast %cst_107 : f32 to vector<16x1xf32>
    %179 = arith.divf %177, %178 : vector<16x1xf32>
    %180 = vector.broadcast %179 : vector<16x1xf32> to vector<16x32xf32>
    %181 = arith.subf %171, %180 : vector<16x32xf32>
    %182 = arith.mulf %181, %181 : vector<16x32xf32>
    %cst_108 = arith.constant dense<0.000000e+00> : vector<16xf32>
    %183 = vector.multi_reduction <add>, %182, %cst_108 [1] : vector<16x32xf32> to vector<16xf32>
    %184 = vector.shape_cast %183 : vector<16xf32> to vector<16x1xf32>
    %cst_109 = arith.constant 3.200000e+01 : f32
    %185 = vector.broadcast %cst_109 : f32 to vector<16x1xf32>
    %186 = arith.divf %184, %185 : vector<16x1xf32>
    %cst_110 = arith.constant 9.99999974E-6 : f32
    %187 = vector.broadcast %cst_110 : f32 to vector<16x1xf32>
    %188 = arith.addf %186, %187 : vector<16x1xf32>
    %189 = math.rsqrt %188 : vector<16x1xf32>
    %190 = vector.broadcast %179 : vector<16x1xf32> to vector<16x32xf32>
    %191 = arith.subf %171, %190 : vector<16x32xf32>
    %192 = vector.broadcast %189 : vector<16x1xf32> to vector<16x32xf32>
    %193 = arith.mulf %191, %192 : vector<16x32xf32>
    %194 = vector.broadcast %173 : vector<1x32xf32> to vector<16x32xf32>
    %195 = arith.mulf %193, %194 : vector<16x32xf32>
    %196 = vector.broadcast %175 : vector<1x32xf32> to vector<16x32xf32>
    %197 = arith.addf %195, %196 : vector<16x32xf32>
    %cst_111 = arith.constant 0.000000e+00 : f32
    %198 = vector.broadcast %cst_111 : f32 to vector<16x32xf32>
    %c6 = arith.constant 6 : index
    %c0_112 = arith.constant 0 : index
    %c0_113 = arith.constant 0 : index
    %199 = vector.load %arg3[%c6, %c0_112, %c0_113] : memref<12x32x16xf32, #tpu.memory_space<vmem>>, vector<1x32x16xf32>
    %200 = vector.shape_cast %199 : vector<1x32x16xf32> to vector<32x16xf32>
    %cst_114 = arith.constant dense<0.000000e+00> : vector<16x16xf32>
    %201 = tpu.matmul %197, %200, %cst_114 {dimension_numbers = #tpu.dot_dimension_numbers<[1], [0], [0], [1], [0, 0, 1, 1], [], []>} : vector<16x32xf32>, vector<32x16xf32>, vector<16x16xf32> -> vector<16x16xf32>
    %c6_115 = arith.constant 6 : index
    %c0_116 = arith.constant 0 : index
    %c0_117 = arith.constant 0 : index
    %202 = vector.load %arg7[%c6_115, %c0_116, %c0_117] : memref<12x1x16xf32, #tpu.memory_space<vmem>>, vector<1x1x16xf32>
    %203 = vector.shape_cast %202 : vector<1x1x16xf32> to vector<1x16xf32>
    %204 = vector.broadcast %203 : vector<1x16xf32> to vector<16x16xf32>
    %205 = arith.addf %201, %204 : vector<16x16xf32>
    %c8 = arith.constant 8 : index
    %c0_118 = arith.constant 0 : index
    %c0_119 = arith.constant 0 : index
    %206 = vector.load %arg3[%c8, %c0_118, %c0_119] : memref<12x32x16xf32, #tpu.memory_space<vmem>>, vector<1x32x16xf32>
    %207 = vector.shape_cast %206 : vector<1x32x16xf32> to vector<32x16xf32>
    %cst_120 = arith.constant dense<0.000000e+00> : vector<16x16xf32>
    %208 = tpu.matmul %197, %207, %cst_120 {dimension_numbers = #tpu.dot_dimension_numbers<[1], [0], [0], [1], [0, 0, 1, 1], [], []>} : vector<16x32xf32>, vector<32x16xf32>, vector<16x16xf32> -> vector<16x16xf32>
    %c8_121 = arith.constant 8 : index
    %c0_122 = arith.constant 0 : index
    %c0_123 = arith.constant 0 : index
    %209 = vector.load %arg7[%c8_121, %c0_122, %c0_123] : memref<12x1x16xf32, #tpu.memory_space<vmem>>, vector<1x1x16xf32>
    %210 = vector.shape_cast %209 : vector<1x1x16xf32> to vector<1x16xf32>
    %211 = vector.broadcast %210 : vector<1x16xf32> to vector<16x16xf32>
    %212 = arith.addf %208, %211 : vector<16x16xf32>
    %c10 = arith.constant 10 : index
    %c0_124 = arith.constant 0 : index
    %c0_125 = arith.constant 0 : index
    %213 = vector.load %arg3[%c10, %c0_124, %c0_125] : memref<12x32x16xf32, #tpu.memory_space<vmem>>, vector<1x32x16xf32>
    %214 = vector.shape_cast %213 : vector<1x32x16xf32> to vector<32x16xf32>
    %cst_126 = arith.constant dense<0.000000e+00> : vector<16x16xf32>
    %215 = tpu.matmul %197, %214, %cst_126 {dimension_numbers = #tpu.dot_dimension_numbers<[1], [0], [0], [1], [0, 0, 1, 1], [], []>} : vector<16x32xf32>, vector<32x16xf32>, vector<16x16xf32> -> vector<16x16xf32>
    %c10_127 = arith.constant 10 : index
    %c0_128 = arith.constant 0 : index
    %c0_129 = arith.constant 0 : index
    %216 = vector.load %arg7[%c10_127, %c0_128, %c0_129] : memref<12x1x16xf32, #tpu.memory_space<vmem>>, vector<1x1x16xf32>
    %217 = vector.shape_cast %216 : vector<1x1x16xf32> to vector<1x16xf32>
    %218 = vector.broadcast %217 : vector<1x16xf32> to vector<16x16xf32>
    %219 = arith.addf %215, %218 : vector<16x16xf32>
    %220 = vector.shape_cast %205 : vector<16x16xf32> to vector<2x8x16xf32>
    %221 = vector.shape_cast %212 : vector<16x16xf32> to vector<2x8x16xf32>
    %222 = vector.shape_cast %219 : vector<16x16xf32> to vector<2x8x16xf32>
    "tpu.trace_start"() <{level = 10 : i32, message = "bqd,bkd->bqk"}> : () -> ()
    %cst_130 = arith.constant dense<0.000000e+00> : vector<2x8x8xf32>
    %223 = tpu.matmul %220, %221, %cst_130 {dimension_numbers = #tpu.dot_dimension_numbers<[2], [2], [1], [1], [0, 0, 0, 1, 1, 1], [0], [0]>} : vector<2x8x16xf32>, vector<2x8x16xf32>, vector<2x8x8xf32> -> vector<2x8x8xf32>
    "tpu.trace_stop"() : () -> ()
    %224 = arith.addf %223, %27 : vector<2x8x8xf32>
    %cst_131 = arith.constant dense<0xFF800000> : vector<2x8xf32>
    %225 = vector.multi_reduction <maximumf>, %224, %cst_131 [2] : vector<2x8x8xf32> to vector<2x8xf32>
    %226 = vector.shape_cast %225 : vector<2x8xf32> to vector<2x8x1xf32>
    %227 = vector.broadcast %226 : vector<2x8x1xf32> to vector<2x8x8xf32>
    %228 = arith.subf %224, %227 : vector<2x8x8xf32>
    %229 = math.exp %228 : vector<2x8x8xf32>
    %cst_132 = arith.constant dense<0.000000e+00> : vector<2x8xf32>
    %230 = vector.multi_reduction <add>, %229, %cst_132 [2] : vector<2x8x8xf32> to vector<2x8xf32>
    %231 = vector.shape_cast %230 : vector<2x8xf32> to vector<2x8x1xf32>
    %232 = tpu.reciprocal %231 {approx = true} : vector<2x8x1xf32> -> vector<2x8x1xf32>
    %233 = vector.broadcast %232 : vector<2x8x1xf32> to vector<2x8x8xf32>
    %234 = arith.mulf %229, %233 : vector<2x8x8xf32>
    "tpu.trace_start"() <{level = 10 : i32, message = "bqk,bkd->bqd"}> : () -> ()
    %cst_133 = arith.constant dense<0.000000e+00> : vector<2x8x16xf32>
    %235 = tpu.matmul %234, %222, %cst_133 {dimension_numbers = #tpu.dot_dimension_numbers<[2], [1], [1], [2], [0, 0, 0, 1, 1, 2], [0], [0]>} : vector<2x8x8xf32>, vector<2x8x16xf32>, vector<2x8x16xf32> -> vector<2x8x16xf32>
    "tpu.trace_stop"() : () -> ()
    %236 = vector.shape_cast %235 : vector<2x8x16xf32> to vector<16x16xf32>
    %c2_134 = arith.constant 2 : index
    %c0_135 = arith.constant 0 : index
    %c0_136 = arith.constant 0 : index
    %237 = vector.load %arg4[%c2_134, %c0_135, %c0_136] : memref<4x16x32xf32, #tpu.memory_space<vmem>>, vector<1x16x32xf32>
    %238 = vector.shape_cast %237 : vector<1x16x32xf32> to vector<16x32xf32>
    %cst_137 = arith.constant dense<0.000000e+00> : vector<16x32xf32>
    %239 = tpu.matmul %236, %238, %cst_137 {dimension_numbers = #tpu.dot_dimension_numbers<[1], [0], [0], [1], [0, 0, 1, 1], [], []>} : vector<16x16xf32>, vector<16x32xf32>, vector<16x32xf32> -> vector<16x32xf32>
    %240 = arith.addf %198, %239 : vector<16x32xf32>
    %c7 = arith.constant 7 : index
    %c0_138 = arith.constant 0 : index
    %c0_139 = arith.constant 0 : index
    %241 = vector.load %arg3[%c7, %c0_138, %c0_139] : memref<12x32x16xf32, #tpu.memory_space<vmem>>, vector<1x32x16xf32>
    %242 = vector.shape_cast %241 : vector<1x32x16xf32> to vector<32x16xf32>
    %cst_140 = arith.constant dense<0.000000e+00> : vector<16x16xf32>
    %243 = tpu.matmul %197, %242, %cst_140 {dimension_numbers = #tpu.dot_dimension_numbers<[1], [0], [0], [1], [0, 0, 1, 1], [], []>} : vector<16x32xf32>, vector<32x16xf32>, vector<16x16xf32> -> vector<16x16xf32>
    %c7_141 = arith.constant 7 : index
    %c0_142 = arith.constant 0 : index
    %c0_143 = arith.constant 0 : index
    %244 = vector.load %arg7[%c7_141, %c0_142, %c0_143] : memref<12x1x16xf32, #tpu.memory_space<vmem>>, vector<1x1x16xf32>
    %245 = vector.shape_cast %244 : vector<1x1x16xf32> to vector<1x16xf32>
    %246 = vector.broadcast %245 : vector<1x16xf32> to vector<16x16xf32>
    %247 = arith.addf %243, %246 : vector<16x16xf32>
    %c9 = arith.constant 9 : index
    %c0_144 = arith.constant 0 : index
    %c0_145 = arith.constant 0 : index
    %248 = vector.load %arg3[%c9, %c0_144, %c0_145] : memref<12x32x16xf32, #tpu.memory_space<vmem>>, vector<1x32x16xf32>
    %249 = vector.shape_cast %248 : vector<1x32x16xf32> to vector<32x16xf32>
    %cst_146 = arith.constant dense<0.000000e+00> : vector<16x16xf32>
    %250 = tpu.matmul %197, %249, %cst_146 {dimension_numbers = #tpu.dot_dimension_numbers<[1], [0], [0], [1], [0, 0, 1, 1], [], []>} : vector<16x32xf32>, vector<32x16xf32>, vector<16x16xf32> -> vector<16x16xf32>
    %c9_147 = arith.constant 9 : index
    %c0_148 = arith.constant 0 : index
    %c0_149 = arith.constant 0 : index
    %251 = vector.load %arg7[%c9_147, %c0_148, %c0_149] : memref<12x1x16xf32, #tpu.memory_space<vmem>>, vector<1x1x16xf32>
    %252 = vector.shape_cast %251 : vector<1x1x16xf32> to vector<1x16xf32>
    %253 = vector.broadcast %252 : vector<1x16xf32> to vector<16x16xf32>
    %254 = arith.addf %250, %253 : vector<16x16xf32>
    %c11 = arith.constant 11 : index
    %c0_150 = arith.constant 0 : index
    %c0_151 = arith.constant 0 : index
    %255 = vector.load %arg3[%c11, %c0_150, %c0_151] : memref<12x32x16xf32, #tpu.memory_space<vmem>>, vector<1x32x16xf32>
    %256 = vector.shape_cast %255 : vector<1x32x16xf32> to vector<32x16xf32>
    %cst_152 = arith.constant dense<0.000000e+00> : vector<16x16xf32>
    %257 = tpu.matmul %197, %256, %cst_152 {dimension_numbers = #tpu.dot_dimension_numbers<[1], [0], [0], [1], [0, 0, 1, 1], [], []>} : vector<16x32xf32>, vector<32x16xf32>, vector<16x16xf32> -> vector<16x16xf32>
    %c11_153 = arith.constant 11 : index
    %c0_154 = arith.constant 0 : index
    %c0_155 = arith.constant 0 : index
    %258 = vector.load %arg7[%c11_153, %c0_154, %c0_155] : memref<12x1x16xf32, #tpu.memory_space<vmem>>, vector<1x1x16xf32>
    %259 = vector.shape_cast %258 : vector<1x1x16xf32> to vector<1x16xf32>
    %260 = vector.broadcast %259 : vector<1x16xf32> to vector<16x16xf32>
    %261 = arith.addf %257, %260 : vector<16x16xf32>
    %262 = vector.shape_cast %247 : vector<16x16xf32> to vector<2x8x16xf32>
    %263 = vector.shape_cast %254 : vector<16x16xf32> to vector<2x8x16xf32>
    %264 = vector.shape_cast %261 : vector<16x16xf32> to vector<2x8x16xf32>
    "tpu.trace_start"() <{level = 10 : i32, message = "bqd,bkd->bqk"}> : () -> ()
    %cst_156 = arith.constant dense<0.000000e+00> : vector<2x8x8xf32>
    %265 = tpu.matmul %262, %263, %cst_156 {dimension_numbers = #tpu.dot_dimension_numbers<[2], [2], [1], [1], [0, 0, 0, 1, 1, 1], [0], [0]>} : vector<2x8x16xf32>, vector<2x8x16xf32>, vector<2x8x8xf32> -> vector<2x8x8xf32>
    "tpu.trace_stop"() : () -> ()
    %266 = arith.addf %265, %27 : vector<2x8x8xf32>
    %cst_157 = arith.constant dense<0xFF800000> : vector<2x8xf32>
    %267 = vector.multi_reduction <maximumf>, %266, %cst_157 [2] : vector<2x8x8xf32> to vector<2x8xf32>
    %268 = vector.shape_cast %267 : vector<2x8xf32> to vector<2x8x1xf32>
    %269 = vector.broadcast %268 : vector<2x8x1xf32> to vector<2x8x8xf32>
    %270 = arith.subf %266, %269 : vector<2x8x8xf32>
    %271 = math.exp %270 : vector<2x8x8xf32>
    %cst_158 = arith.constant dense<0.000000e+00> : vector<2x8xf32>
    %272 = vector.multi_reduction <add>, %271, %cst_158 [2] : vector<2x8x8xf32> to vector<2x8xf32>
    %273 = vector.shape_cast %272 : vector<2x8xf32> to vector<2x8x1xf32>
    %274 = tpu.reciprocal %273 {approx = true} : vector<2x8x1xf32> -> vector<2x8x1xf32>
    %275 = vector.broadcast %274 : vector<2x8x1xf32> to vector<2x8x8xf32>
    %276 = arith.mulf %271, %275 : vector<2x8x8xf32>
    "tpu.trace_start"() <{level = 10 : i32, message = "bqk,bkd->bqd"}> : () -> ()
    %cst_159 = arith.constant dense<0.000000e+00> : vector<2x8x16xf32>
    %277 = tpu.matmul %276, %264, %cst_159 {dimension_numbers = #tpu.dot_dimension_numbers<[2], [1], [1], [2], [0, 0, 0, 1, 1, 2], [0], [0]>} : vector<2x8x8xf32>, vector<2x8x16xf32>, vector<2x8x16xf32> -> vector<2x8x16xf32>
    "tpu.trace_stop"() : () -> ()
    %278 = vector.shape_cast %277 : vector<2x8x16xf32> to vector<16x16xf32>
    %c3_160 = arith.constant 3 : index
    %c0_161 = arith.constant 0 : index
    %c0_162 = arith.constant 0 : index
    %279 = vector.load %arg4[%c3_160, %c0_161, %c0_162] : memref<4x16x32xf32, #tpu.memory_space<vmem>>, vector<1x16x32xf32>
    %280 = vector.shape_cast %279 : vector<1x16x32xf32> to vector<16x32xf32>
    %cst_163 = arith.constant dense<0.000000e+00> : vector<16x32xf32>
    %281 = tpu.matmul %278, %280, %cst_163 {dimension_numbers = #tpu.dot_dimension_numbers<[1], [0], [0], [1], [0, 0, 1, 1], [], []>} : vector<16x16xf32>, vector<16x32xf32>, vector<16x32xf32> -> vector<16x32xf32>
    %282 = arith.addf %240, %281 : vector<16x32xf32>
    %c6_164 = arith.constant 6 : index
    %c0_165 = arith.constant 0 : index
    %c0_166 = arith.constant 0 : index
    %283 = vector.load %arg8[%c6_164, %c0_165, %c0_166] : memref<12x1x32xf32, #tpu.memory_space<vmem>>, vector<1x1x32xf32>
    %284 = vector.shape_cast %283 : vector<1x1x32xf32> to vector<1x32xf32>
    %285 = vector.broadcast %284 : vector<1x32xf32> to vector<16x32xf32>
    %286 = arith.addf %282, %285 : vector<16x32xf32>
    %287 = arith.addf %197, %286 : vector<16x32xf32>
    %c7_167 = arith.constant 7 : index
    %c0_168 = arith.constant 0 : index
    %c0_169 = arith.constant 0 : index
    %288 = vector.load %arg8[%c7_167, %c0_168, %c0_169] : memref<12x1x32xf32, #tpu.memory_space<vmem>>, vector<1x1x32xf32>
    %289 = vector.shape_cast %288 : vector<1x1x32xf32> to vector<1x32xf32>
    %c8_170 = arith.constant 8 : index
    %c0_171 = arith.constant 0 : index
    %c0_172 = arith.constant 0 : index
    %290 = vector.load %arg8[%c8_170, %c0_171, %c0_172] : memref<12x1x32xf32, #tpu.memory_space<vmem>>, vector<1x1x32xf32>
    %291 = vector.shape_cast %290 : vector<1x1x32xf32> to vector<1x32xf32>
    %cst_173 = arith.constant dense<0.000000e+00> : vector<16xf32>
    %292 = vector.multi_reduction <add>, %287, %cst_173 [1] : vector<16x32xf32> to vector<16xf32>
    %293 = vector.shape_cast %292 : vector<16xf32> to vector<16x1xf32>
    %cst_174 = arith.constant 3.200000e+01 : f32
    %294 = vector.broadcast %cst_174 : f32 to vector<16x1xf32>
    %295 = arith.divf %293, %294 : vector<16x1xf32>
    %296 = vector.broadcast %295 : vector<16x1xf32> to vector<16x32xf32>
    %297 = arith.subf %287, %296 : vector<16x32xf32>
    %298 = arith.mulf %297, %297 : vector<16x32xf32>
    %cst_175 = arith.constant dense<0.000000e+00> : vector<16xf32>
    %299 = vector.multi_reduction <add>, %298, %cst_175 [1] : vector<16x32xf32> to vector<16xf32>
    %300 = vector.shape_cast %299 : vector<16xf32> to vector<16x1xf32>
    %cst_176 = arith.constant 3.200000e+01 : f32
    %301 = vector.broadcast %cst_176 : f32 to vector<16x1xf32>
    %302 = arith.divf %300, %301 : vector<16x1xf32>
    %cst_177 = arith.constant 9.99999974E-6 : f32
    %303 = vector.broadcast %cst_177 : f32 to vector<16x1xf32>
    %304 = arith.addf %302, %303 : vector<16x1xf32>
    %305 = math.rsqrt %304 : vector<16x1xf32>
    %306 = vector.broadcast %295 : vector<16x1xf32> to vector<16x32xf32>
    %307 = arith.subf %287, %306 : vector<16x32xf32>
    %308 = vector.broadcast %305 : vector<16x1xf32> to vector<16x32xf32>
    %309 = arith.mulf %307, %308 : vector<16x32xf32>
    %310 = vector.broadcast %289 : vector<1x32xf32> to vector<16x32xf32>
    %311 = arith.mulf %309, %310 : vector<16x32xf32>
    %312 = vector.broadcast %291 : vector<1x32xf32> to vector<16x32xf32>
    %313 = arith.addf %311, %312 : vector<16x32xf32>
    %c1_178 = arith.constant 1 : index
    %c0_179 = arith.constant 0 : index
    %c0_180 = arith.constant 0 : index
    %314 = vector.load %arg5[%c1_178, %c0_179, %c0_180] : memref<2x32x64xf32, #tpu.memory_space<vmem>>, vector<1x32x64xf32>
    %315 = vector.shape_cast %314 : vector<1x32x64xf32> to vector<32x64xf32>
    %cst_181 = arith.constant dense<0.000000e+00> : vector<16x64xf32>
    %316 = tpu.matmul %313, %315, %cst_181 {dimension_numbers = #tpu.dot_dimension_numbers<[1], [0], [0], [1], [0, 0, 1, 1], [], []>} : vector<16x32xf32>, vector<32x64xf32>, vector<16x64xf32> -> vector<16x64xf32>
    %c1_182 = arith.constant 1 : index
    %c0_183 = arith.constant 0 : index
    %c0_184 = arith.constant 0 : index
    %317 = vector.load %arg9[%c1_182, %c0_183, %c0_184] : memref<2x1x64xf32, #tpu.memory_space<vmem>>, vector<1x1x64xf32>
    %318 = vector.shape_cast %317 : vector<1x1x64xf32> to vector<1x64xf32>
    %319 = vector.broadcast %318 : vector<1x64xf32> to vector<16x64xf32>
    %320 = arith.addf %316, %319 : vector<16x64xf32>
    %321 = arith.mulf %320, %320 : vector<16x64xf32>
    %322 = arith.mulf %320, %321 : vector<16x64xf32>
    %cst_185 = arith.constant 4.471500e-02 : f32
    %323 = vector.broadcast %cst_185 : f32 to vector<16x64xf32>
    %324 = arith.mulf %323, %322 : vector<16x64xf32>
    %325 = arith.addf %320, %324 : vector<16x64xf32>
    %cst_186 = arith.constant 0.797884583 : f32
    %326 = vector.broadcast %cst_186 : f32 to vector<16x64xf32>
    %327 = arith.mulf %326, %325 : vector<16x64xf32>
    %328 = math.tanh %327 : vector<16x64xf32>
    %cst_187 = arith.constant 1.000000e+00 : f32
    %329 = vector.broadcast %cst_187 : f32 to vector<16x64xf32>
    %330 = arith.addf %329, %328 : vector<16x64xf32>
    %cst_188 = arith.constant 5.000000e-01 : f32
    %331 = vector.broadcast %cst_188 : f32 to vector<16x64xf32>
    %332 = arith.mulf %331, %330 : vector<16x64xf32>
    %333 = arith.mulf %320, %332 : vector<16x64xf32>
    %c1_189 = arith.constant 1 : index
    %c0_190 = arith.constant 0 : index
    %c0_191 = arith.constant 0 : index
    %334 = vector.load %arg6[%c1_189, %c0_190, %c0_191] : memref<2x64x32xf32, #tpu.memory_space<vmem>>, vector<1x64x32xf32>
    %335 = vector.shape_cast %334 : vector<1x64x32xf32> to vector<64x32xf32>
    %cst_192 = arith.constant dense<0.000000e+00> : vector<16x32xf32>
    %336 = tpu.matmul %333, %335, %cst_192 {dimension_numbers = #tpu.dot_dimension_numbers<[1], [0], [0], [1], [0, 0, 1, 1], [], []>} : vector<16x64xf32>, vector<64x32xf32>, vector<16x32xf32> -> vector<16x32xf32>
    %c9_193 = arith.constant 9 : index
    %c0_194 = arith.constant 0 : index
    %c0_195 = arith.constant 0 : index
    %337 = vector.load %arg8[%c9_193, %c0_194, %c0_195] : memref<12x1x32xf32, #tpu.memory_space<vmem>>, vector<1x1x32xf32>
    %338 = vector.shape_cast %337 : vector<1x1x32xf32> to vector<1x32xf32>
    %339 = vector.broadcast %338 : vector<1x32xf32> to vector<16x32xf32>
    %340 = arith.addf %336, %339 : vector<16x32xf32>
    %341 = arith.addf %313, %340 : vector<16x32xf32>
    %c10_196 = arith.constant 10 : index
    %c0_197 = arith.constant 0 : index
    %c0_198 = arith.constant 0 : index
    %342 = vector.load %arg8[%c10_196, %c0_197, %c0_198] : memref<12x1x32xf32, #tpu.memory_space<vmem>>, vector<1x1x32xf32>
    %343 = vector.shape_cast %342 : vector<1x1x32xf32> to vector<1x32xf32>
    %c11_199 = arith.constant 11 : index
    %c0_200 = arith.constant 0 : index
    %c0_201 = arith.constant 0 : index
    %344 = vector.load %arg8[%c11_199, %c0_200, %c0_201] : memref<12x1x32xf32, #tpu.memory_space<vmem>>, vector<1x1x32xf32>
    %345 = vector.shape_cast %344 : vector<1x1x32xf32> to vector<1x32xf32>
    %cst_202 = arith.constant dense<0.000000e+00> : vector<16xf32>
    %346 = vector.multi_reduction <add>, %341, %cst_202 [1] : vector<16x32xf32> to vector<16xf32>
    %347 = vector.shape_cast %346 : vector<16xf32> to vector<16x1xf32>
    %cst_203 = arith.constant 3.200000e+01 : f32
    %348 = vector.broadcast %cst_203 : f32 to vector<16x1xf32>
    %349 = arith.divf %347, %348 : vector<16x1xf32>
    %350 = vector.broadcast %349 : vector<16x1xf32> to vector<16x32xf32>
    %351 = arith.subf %341, %350 : vector<16x32xf32>
    %352 = arith.mulf %351, %351 : vector<16x32xf32>
    %cst_204 = arith.constant dense<0.000000e+00> : vector<16xf32>
    %353 = vector.multi_reduction <add>, %352, %cst_204 [1] : vector<16x32xf32> to vector<16xf32>
    %354 = vector.shape_cast %353 : vector<16xf32> to vector<16x1xf32>
    %cst_205 = arith.constant 3.200000e+01 : f32
    %355 = vector.broadcast %cst_205 : f32 to vector<16x1xf32>
    %356 = arith.divf %354, %355 : vector<16x1xf32>
    %cst_206 = arith.constant 9.99999974E-6 : f32
    %357 = vector.broadcast %cst_206 : f32 to vector<16x1xf32>
    %358 = arith.addf %356, %357 : vector<16x1xf32>
    %359 = math.rsqrt %358 : vector<16x1xf32>
    %360 = vector.broadcast %349 : vector<16x1xf32> to vector<16x32xf32>
    %361 = arith.subf %341, %360 : vector<16x32xf32>
    %362 = vector.broadcast %359 : vector<16x1xf32> to vector<16x32xf32>
    %363 = arith.mulf %361, %362 : vector<16x32xf32>
    %364 = vector.broadcast %343 : vector<1x32xf32> to vector<16x32xf32>
    %365 = arith.mulf %363, %364 : vector<16x32xf32>
    %366 = vector.broadcast %345 : vector<1x32xf32> to vector<16x32xf32>
    %367 = arith.addf %365, %366 : vector<16x32xf32>
    %c0_207 = arith.constant 0 : index
    %c0_208 = arith.constant 0 : index
    %368 = vector.load %arg10[%c0_207, %c0_208] : memref<32x128xf32, #tpu.memory_space<vmem>>, vector<32x128xf32>
    %cst_209 = arith.constant dense<0.000000e+00> : vector<16x128xf32>
    %369 = tpu.matmul %367, %368, %cst_209 {dimension_numbers = #tpu.dot_dimension_numbers<[1], [0], [0], [1], [0, 0, 1, 1], [], []>} : vector<16x32xf32>, vector<32x128xf32>, vector<16x128xf32> -> vector<16x128xf32>
    %c0_210 = arith.constant 0 : index
    %c0_211 = arith.constant 0 : index
    %370 = vector.load %arg11[%c0_210, %c0_211] : memref<1x128xf32, #tpu.memory_space<vmem>>, vector<1x128xf32>
    %371 = vector.broadcast %370 : vector<1x128xf32> to vector<16x128xf32>
    %372 = arith.addf %369, %371 : vector<16x128xf32>
    %373 = arith.negf %372 : vector<16x128xf32>
    %374 = math.exp %373 : vector<16x128xf32>
    %cst_212 = arith.constant 1.000000e+00 : f32
    %375 = vector.broadcast %cst_212 : f32 to vector<16x128xf32>
    %376 = arith.addf %375, %374 : vector<16x128xf32>
    %377 = arith.divf %375, %376 : vector<16x128xf32>
    %c0_213 = arith.constant 0 : index
    %c0_214 = arith.constant 0 : index
    %378 = vector.load %arg12[%c0_213, %c0_214] : memref<16x128xf32, #tpu.memory_space<vmem>>, vector<16x128xf32>
    tpu.vector_store %arg12[%c0_213, %c0_214], %377 {strides = array<i32>} : memref<16x128xf32, #tpu.memory_space<vmem>>, vector<16x128xf32>,
    return
  }
}

</mosaic_0001>

<bundles_post_ra>
// kernel: unixcoder_classifier_forward.1
= control target key start
LH: loop header
LB: loop body
LE: loop exit
PB: predicated region body
PF: predicated region fallthrough
CT: control target
= control target key end

     0   :  { %vm46_vm0 = vcmask 261120   ;;  %v4408_v60 = vmov 0.0   ;;  %vm4409_vm1 = vmmov 0   ;;  %vm360_vm2 = vcmask 130048   ;;  %s5051_s0 = inlined_call_operand.vmem [shape: f32[16,32], index: 0, kind: input, shape index: {}]   ;;  %s5052_s3 = inlined_call_operand.vmem [shape: f32[12,32,16], index: 3, kind: input, shape index: {}]   ;;  %s5053_s2 = inlined_call_operand.vmem [shape: f32[2,1,32], index: 2, kind: input, shape index: {}]   ;;  %s5054_s7 = inlined_call_operand.vmem [shape: f32[12,1,16], index: 7, kind: input, shape index: {}]   ;;  %s5055_s1 = inlined_call_operand.vmem [shape: f32[2,8,8], index: 1, kind: input, shape index: {}]   ;;  %s5056_s4 = inlined_call_operand.vmem [shape: f32[4,16,32], index: 4, kind: input, shape index: {}]   ;;  %s5057_s8 = inlined_call_operand.vmem [shape: f32[12,1,32], index: 8, kind: input, shape index: {}]   ;;  %s5058_s5 = inlined_call_operand.vmem [shape: f32[2,32,64], index: 5, kind: input, shape index: {}]   ;;  %s5059_s6 = inlined_call_operand.vmem [shape: f32[2,64,32], index: 6, kind: input, shape index: {}]   ;;  %s5060_s9 = inlined_call_operand.vmem [shape: f32[2,1,64], index: 9, kind: input, shape index: {}]   ;;  %s5061_s10 = inlined_call_operand.vmem [shape: f32[32,128], index: 10, kind: input, shape index: {}]   ;;  %s5062_s11 = inlined_call_operand.vmem [shape: f32[1,128], index: 11, kind: input, shape index: {}]   ;;  %s5063_s12 = inlined_call_operand.vmem [shape: f32[16,128], index: 12, kind: output, shape index: {}]  }
   0x1   :  { %v41_v0 = vld [vmem:[%s5051_s0] sm:$0xff]  ;;  %v42_v1 = vld [vmem:[%s5051_s0 + $0x8] sm:$0xff]  ;;  %v94_v20 = vld [vmem:[%s5052_s3 + $0x10] sm:$0xff]  ;;  %vm513_vm3 = vcmask 64512   ;;  %vm1616_vm4 = vcmask 523264  }
   0x2   :  { %v47_v2 = vsel %vm46_vm0, %v41_v0, 0.0  ;;  %v50_v3 = vsel %vm46_vm0, %v42_v1, 0.0  ;;  %v92_v14 = vld [vmem:[%s5052_s3] sm:$0xff]  ;;  %v93_v15 = vld [vmem:[%s5052_s3 + $0x8] sm:$0xff]  ;;  %v95_v21 = vld [vmem:[%s5052_s3 + $0x18] sm:$0xff] }
   0x3   :  { %48 = vadd.xlane.f32.xlu0 %v47_v2  ;;  %v4166_v16 = vpack.c.bf16 %v93_v15, %v92_v14  ;;  %v3520_v17 = vld [vmem:[%s5052_s3 + $0x40] sm:$0xff]  ;;  %v3521_v18 = vld [vmem:[%s5052_s3 + $0x48] sm:$0xff]  ;;  %v4170_v22 = vpack.c.bf16 %v95_v21, %v94_v20  ;;  %v3522_v23 = vld [vmem:[%s5052_s3 + $0x50] sm:$0xff] }
   0x4   :  { %v4174_v19 = vpack.c.bf16 %v3521_v18, %v3520_v17  ;;  %v3523_v24 = vld [vmem:[%s5052_s3 + $0x58] sm:$0xff]  ;;  %v3528_v26 = vld [vmem:[%s5052_s3 + $0x80] sm:$0xff]  ;;  %v3529_v27 = vld [vmem:[%s5052_s3 + $0x88] sm:$0xff] }
   0x5   :  { %4167 = vmatprep.subr.bf16.mxu0 %v4166_v16  ;;  %v4178_v25 = vpack.c.bf16 %v3523_v24, %v3522_v23  ;;  %v4182_v28 = vpack.c.bf16 %v3529_v27, %v3528_v26  ;;  %v3515_v36 = vld [vmem:[%s5053_s2] ss:$0 sm:$0xff]  ;;  %v3516_v38 = vld [vmem:[%s5053_s2 + $0x1] ss:$0 sm:$0xff]  ;;  %v3530_v43 = vld [vmem:[%s5052_s3 + $0x90] sm:$0xff] }
   0x6   :  { %4169 = vmatpush3.bf16.msra.mxu0 %v4166_v16  ;;  %4175 = vmatprep.subr.bf16.mxu1 %v4174_v19  ;;  %v3531_v44 = vld [vmem:[%s5052_s3 + $0x98] sm:$0xff]  ;;  %v3542_v48 = vld [vmem:[%s5052_s3 + $0x20] sm:$0xff]  ;;  %v3543_v49 = vld [vmem:[%s5052_s3 + $0x28] sm:$0xff] }
   0x7   :  { %51 = vadd.xlane.f32.xlu0 %v50_v3  ;;  %4177 = vmatpush3.bf16.msra.mxu1 %v4174_v19  ;;  %v4186_v47 = vpack.c.bf16 %v3531_v44, %v3530_v43  ;;  %v4190_v50 = vpack.c.bf16 %v3543_v49, %v3542_v48  ;;  %v3544_v51 = vld [vmem:[%s5052_s3 + $0x30] sm:$0xff]  ;;  %v3545_v52 = vld [vmem:[%s5052_s3 + $0x38] sm:$0xff]  ;;  %v3558_v54 = vld [vmem:[%s5052_s3 + $0xa0] sm:$0xff] }
   0x8   :  { %4171 = vmatprep.subr.bf16.mxu0 %v4170_v22  ;;  %4179 = vmatprep.subr.bf16.mxu1 %v4178_v25  ;;  %v4194_v53 = vpack.c.bf16 %v3545_v52, %v3544_v51  ;;  %v3559_v55 = vld [vmem:[%s5052_s3 + $0xa8] sm:$0xff]  ;;  %v3560_v57 = vld [vmem:[%s5052_s3 + $0xb0] sm:$0xff]  ;;  %v3561_v58 = vld [vmem:[%s5052_s3 + $0xb8] sm:$0xff] }
   0x9   :  { %v4206_v56 = vpack.c.bf16 %v3559_v55, %v3558_v54  ;;  %v4210_v59 = vpack.c.bf16 %v3561_v58, %v3560_v57  ;;  %v3525_v61 = vld [vmem:[%s5054_s7 + $0x2] ss:$0 sm:$0xff]  ;;  %v3517_v2 = vld [vmem:[%s5054_s7] ss:$0 sm:$0xff]  ;;  %v3563_v14 = vld [vmem:[%s5054_s7 + $0x5] ss:$0 sm:$0xff] }
   0xa   :  { %4173 = vmatpush3.bf16.msra.mxu0 %v4170_v22  ;;  %v4613_v19 = vld [vmem:[%s5055_s1] sm:$0xff]  ;;  %v4619_v23 = vld [vmem:[%s5055_s1 + $0x8] sm:$0xff]  ;;  %v3552_v48 = vld [vmem:[%s5052_s3 + $0x70] sm:$0xff] }
   0xb   :  { %4181 = vmatpush3.bf16.msra.mxu1 %v4178_v25  ;;  %4183 = vmatprep.subr.bf16.mxu0 %v4182_v28  ;;  %v3551_v43 = vld [vmem:[%s5052_s3 + $0x68] sm:$0xff]  ;;  %v3553_v49 = vld [vmem:[%s5052_s3 + $0x78] sm:$0xff]  ;;  %v3555_v57 = vld [vmem:[%s5054_s7 + $0x3] ss:$0 sm:$0xff] }
   0xc   :  { %3888 = vmatprep.subr.mxu1 %v4408_v60  ;;  %v4202_v52 = vpack.c.bf16 %v3553_v49, %v3552_v48 }
  0x90   :  { %v49_v4 = vpop.xlane.xlu0 %48 }
  0x91   :  { %v54_v5 = vmul.f32 0.03125, %v49_v4 }
  0x93   :  { %v56_v6 = vsub.f32 %v41_v0, %v54_v5 }
  0x94   :  { %v52_v7 = vpop.xlane.xlu0 %51 }
  0x95   :  { %v55_v8 = vmul.f32 0.03125, %v52_v7  ;;  %v58_v9 = vmul.f32 %v56_v6, %v56_v6 }
  0x97   :  { %v57_v10 = vsub.f32 %v42_v1, %v55_v8  ;;  %v60_v11 = vsel %vm46_vm0, %v58_v9, 0.0 }
  0x98   :  { %61 = vadd.xlane.f32.xlu1 %v60_v11 }
  0x99   :  { %v59_v12 = vmul.f32 %v57_v10, %v57_v10 }
  0x9b   :  { %v63_v13 = vsel %vm46_vm0, %v59_v12, 0.0 }
  0x9c   :  { %64 = vadd.xlane.f32.xlu1 %v63_v13 }
 0x125   :  { %v62_v29 = vpop.xlane.xlu1 %61 }
 0x126   :  { %v66_v30 = vmul.f32 0.03125, %v62_v29 }
 0x128   :  { %v68_v31 = vadd.f32 1e-05, %v66_v30 }
 0x129   :  { %v65_v32 = vpop.xlane.xlu1 %64 }
 0x12a   :  { %4340 = vrsqrt.f32 %v68_v31  ;;  %v67_v33 = vmul.f32 0.03125, %v65_v32 }
 0x12c   :  { %v69_v34 = vadd.f32 1e-05, %v67_v33 }
 0x12e   :  { %4342 = vrsqrt.f32 %v69_v34 }
 0x134   :  { %v4341_v35 = vpop.eup %4340 }
 0x135   :  { %v72_v37 = vmul.f32 %v4341_v35, %v56_v6  ;;  %v3533_v6 = vld [vmem:[%s5054_s7 + $0x4] ss:$0 sm:$0xff] }
 0x137   :  { %v80_v39 = vmul.f32 %v3515_v36, %v72_v37 }
 0x138   :  { %v4343_v40 = vpop.eup %4342 }
 0x139   :  { %v4521_v41 = vadd.f32 %v3516_v38, %v80_v39  ;;  %v73_v42 = vmul.f32 %v4343_v40, %v57_v10 }
 0x13b   :  { %v81_v45 = vmul.f32 %v3515_v36, %v73_v42  ;;  %3863 = vmatprep.mubr.msk.f32.mxu0 %vm46_vm0, %v4521_v41  ;;  %3874 = vmatprep.mubr.msk.f32.mxu1 %vm46_vm0, %v4521_v41  ;;  %v3550_v42 = vld [vmem:[%s5052_s3 + $0x60] sm:$0xff] }
 0x13d   :  { %v4533_v46 = vadd.f32 %v3516_v38, %v81_v45 }
 0x13f   :  { %3864 = vmatmul.mubr.msk.f32.vlgmr.msra.gmra.mrb[0].mxu0 %vm46_vm0, %v4533_v46  ;;  %3875 = vmatmul.mubr.msk.f32.vlgmr.msra.gmra.mrb[0].mxu1 %vm46_vm0, %v4533_v46 }
 0x140   :  { %4185 = vmatpush3.bf16.msra.mxu0 %v4182_v28  ;;  %3885 = vmatprep.mubr.msk.f32.mxu0 %vm46_vm0, %v4521_v41 }
 0x141   :  { %4187 = vmatprep.subr.bf16.mxu0 %v4186_v47  ;;  %3890 = vmatprep.mubr.msk.f32.mxu1 %vm4409_vm1, %v4408_v60 }
 0x144   :  { %4189 = vmatpush3.bf16.msra.mxu0 %v4186_v47  ;;  %v4198_v47 = vpack.c.bf16 %v3551_v43, %v3550_v42 }
 0x145   :  { %4191 = vmatprep.subr.bf16.mxu0 %v4190_v50 }
 0x147   :  { %3886 = vmatmul.mubr.msk.f32.vlgmr.msra.gmra.mrb[2].mxu0 %vm46_vm0, %v4533_v46 }
 0x148   :  { %4193 = vmatpush3.bf16.msra.mxu0 %v4190_v50  ;;  %3916 = vmatprep.mubr.msk.f32.mxu0 %vm46_vm0, %v4521_v41 }
 0x149   :  { %4195 = vmatprep.subr.bf16.mxu0 %v4194_v53 }
 0x14c   :  { %4197 = vmatpush3.bf16.msra.mxu0 %v4194_v53 }
 0x14d   :  { %4207 = vmatprep.subr.bf16.mxu0 %v4206_v56 }
 0x14f   :  { %3917 = vmatmul.mubr.msk.f32.vlgmr.msra.gmra.mrb[4].mxu0 %vm46_vm0, %v4533_v46 }
 0x150   :  { %4209 = vmatpush3.bf16.msra.mxu0 %v4206_v56  ;;  %3938 = vmatprep.mubr.msk.f32.mxu0 %vm46_vm0, %v4521_v41 }
 0x151   :  { %4211 = vmatprep.subr.bf16.mxu0 %v4210_v59 }
 0x154   :  { %4213 = vmatpush3.bf16.msra.mxu0 %v4210_v59 }
 0x155   :  { %3951 = vmatprep.subr.mxu0 %v4408_v60 }
 0x157   :  { %3939 = vmatmul.mubr.msk.f32.vlgmr.msra.gmra.mrb[6].mxu0 %vm46_vm0, %v4533_v46 }
 0x158   :  { %3953 = vmatprep.mubr.msk.f32.mxu0 %vm4409_vm1, %v4408_v60 }
 0x212   :  { %v3865_v62 = vpop.f32.mrb[0].mxu0  ;;  %v3876_v63 = vpop.f32.mrb[0].mxu1 }
 0x213   :  { %v175_v0 = vpop.f32.mrb[1].mxu0  ;;  %v263_v1 = vpop.f32.mrb[1].mxu1  ;;  %v269_v5 = vadd.f32 %v3876_v63, %v3525_v61  ;;  %v181_v8 = vadd.f32 %v3865_v62, %v3517_v2 }
 0x214   :  { %v264_v3 = vadd.f32 %v3525_v61, %v263_v1  ;;  %v176_v4 = vadd.f32 %v3517_v2, %v175_v0  ;;  %v3547_v61 = vld [vmem:[%s5054_s7 + $0x1] ss:$0 sm:$0xff] }
 0x216   :  { %3889 = vmatpush3.xpose.msk.msra.mxu1 %vm360_vm2, %v264_v3 }
 0x217   :  { %3893 = vmatprep.subr.mxu1 %v4408_v60 }
 0x219   :  { %3891 = vmatmul.mubr.msk.f32.vlgmr.msra.gmra.mrb[2].mxu1 %vm360_vm2, %v176_v4 }
 0x21a   :  { %v3887_v7 = vpop.f32.mrb[2].mxu0  ;;  %3894 = vmatpush3.xpose.msk.msra.mxu1 %vm360_vm2, %v269_v5  ;;  %3895 = vmatprep.mubr.msk.f32.mxu1 %vm4409_vm1, %v4408_v60 }
 0x21b   :  { %v357_v9 = vadd.f32 %v3887_v7, %v3533_v6  ;;  %v351_v10 = vpop.f32.mrb[3].mxu0  ;;  %3898 = vmatprep.subr.mxu1 %v4408_v60 }
 0x21c   :  { %v352_v11 = vadd.f32 %v3533_v6, %v351_v10 }
 0x21d   :  { %3896 = vmatmul.mubr.msk.f32.vlgmr.msra.gmra.mrb[4].mxu1 %vm360_vm2, %v181_v8 }
 0x21e   :  { %3899 = vmatpush3.msra.mxu1 %v352_v11  ;;  %3900 = vmatprep.mubr.msk.f32.mxu1 %vm4409_vm1, %v4408_v60 }
 0x21f   :  { %3903 = vmatprep.subr.mxu1 %v4408_v60 }
 0x222   :  { %v4601_v12 = vpop.f32.mrb[4].mxu0 }
 0x223   :  { %v4603_v13 = vpop.f32.mrb[5].mxu0  ;;  %v769_v1 = vadd.f32 %v4601_v12, %v3547_v61 }
 0x224   :  { %v764_v63 = vadd.f32 %v3547_v61, %v4603_v13  ;;  %v1492_v61 = vld [vmem:[%s5058_s5 + $0x10] sm:$0xff] }
 0x22a   :  { %v3940_v15 = vpop.f32.mrb[6].mxu0 }
 0x22b   :  { %v4608_v16 = vadd.f32 %v3940_v15, %v3563_v14  ;;  %v939_v17 = vpop.f32.mrb[7].mxu0 }
 0x22c   :  { %v940_v18 = vadd.f32 %v3563_v14, %v939_v17 }
 0x22e   :  { %3952 = vmatpush3.msra.mxu0 %v940_v18 }
 0x2ec   :  { %v433_v20 = vpop.f32.mrb[2].mxu1 }
 0x2ed   :  { %v434_v21 = vadd.f32 %v433_v20, %v4613_v19  ;;  %v3892_v22 = vpop.f32.mrb[3].mxu1 }
 0x2ef   :  { %v514_v24 = vsel %vm513_vm3, %v434_v21, -inf }
 0x2f0   :  { %515 = vmax.xlane.f32.xlu0 %v514_v24  ;;  %v509_v25 = vpop.f32.mrb[4].mxu1 }
 0x2f1   :  { %v510_v26 = vadd.f32 %v509_v25, %v4619_v23  ;;  %v3897_v27 = vpop.f32.mrb[5].mxu1 }
 0x2f3   :  { %v517_v28 = vsel %vm513_vm3, %v510_v26, -inf }
 0x2f4   :  { %518 = vmax.xlane.f32.xlu1 %v517_v28  ;;  %v3572_v28 = vld [vmem:[%s5056_s4 + $0x10] sm:$0xff] }
 0x37d   :  { %v516_v29 = vpop.xlane.xlu0 %515 }
 0x37e   :  { %v520_v30 = vsub.f32 %v434_v21, %v516_v29  ;;  %v3573_v29 = vld [vmem:[%s5056_s4 + $0x18] sm:$0xff] }
 0x380   :  { %v522_v31 = vmul.f32 1.442695, %v520_v30  ;;  %v4214_v30 = vpack.c.bf16 %v3573_v29, %v3572_v28  ;;  %v1607_v28 = vld [vmem:[%s5059_s6 + $0x38] sm:$0xff] }
 0x381   :  { %v519_v32 = vpop.xlane.xlu1 %518 }
 0x382   :  { %4344 = vpow2.f32 %v522_v31  ;;  %v521_v33 = vsub.f32 %v510_v26, %v519_v32  ;;  %4215 = vmatprep.subr.bf16.mxu0 %v4214_v30  ;;  %v682_v31 = vld [vmem:[%s5056_s4] sm:$0xff]  ;;  %v683_v32 = vld [vmem:[%s5056_s4 + $0x8] sm:$0xff] }
 0x384   :  { %v524_v34 = vmul.f32 1.442695, %v521_v33  ;;  %v4218_v33 = vpack.c.bf16 %v683_v32, %v682_v31 }
 0x386   :  { %4346 = vpow2.f32 %v524_v34 }
 0x38c   :  { %v4345_v35 = vpop.eup %4344 }
 0x38d   :  { %v526_v36 = vsel %vm513_vm3, %v4345_v35, 0.0 }
 0x38e   :  { %527 = vadd.xlane.f32.xlu0 %v526_v36 }
 0x390   :  { %v4347_v37 = vpop.eup %4346 }
 0x391   :  { %v529_v38 = vsel %vm513_vm3, %v4347_v37, 0.0 }
 0x392   :  { %530 = vadd.xlane.f32.xlu1 %v529_v38  ;;  %v3578_v38 = vld [vmem:[%s5057_s8] ss:$0 sm:$0xff] }
 0x41b   :  { %v528_v39 = vpop.xlane.xlu0 %527 }
 0x41c   :  { %4348 = vrcp.f32 %v528_v39 }
 0x41f   :  { %v531_v40 = vpop.xlane.xlu1 %530 }
 0x420   :  { %4350 = vrcp.f32 %v531_v40 }
 0x426   :  { %v4349_v44 = vpop.eup %4348 }
 0x427   :  { %v534_v45 = vmul.f32 %v4349_v44, %v4345_v35 }
 0x429   :  { %3901 = vmatmul.mubr.msk.f32.vlgmr.msra.gmra.mrb[6].mxu1 %vm513_vm3, %v534_v45 }
 0x42a   :  { %v4351_v50 = vpop.eup %4350  ;;  %3904 = vmatpush3.msra.mxu1 %v357_v9  ;;  %3905 = vmatprep.mubr.msk.f32.mxu1 %vm4409_vm1, %v4408_v60 }
 0x42b   :  { %v535_v51 = vmul.f32 %v4351_v50, %v4347_v37  ;;  %4199 = vmatprep.subr.bf16.mxu1 %v4198_v47 }
 0x42d   :  { %3906 = vmatmul.mubr.msk.f32.vlgmr.msra.gmra.mrb[8].mxu1 %vm513_vm3, %v535_v51 }
 0x42e   :  { %4201 = vmatpush3.bf16.msra.mxu1 %v4198_v47  ;;  %3927 = vmatprep.mubr.msk.f32.mxu1 %vm46_vm0, %v4521_v41 }
 0x42f   :  { %4203 = vmatprep.subr.bf16.mxu1 %v4202_v52 }
 0x432   :  { %4205 = vmatpush3.bf16.msra.mxu1 %v4202_v52 }
 0x433   :  { %3941 = vmatprep.subr.mxu1 %v4408_v60 }
 0x435   :  { %3928 = vmatmul.mubr.msk.f32.vlgmr.msra.gmra.mrb[10].mxu1 %vm46_vm0, %v4533_v46 }
 0x436   :  { %3943 = vmatprep.mubr.msk.f32.mxu1 %vm4409_vm1, %v4408_v60 }
 0x4fc   :  { %v4649_v53 = vpop.f32.mrb[6].mxu1 }
 0x4fd   :  { %v3902_v54 = vpop.f32.mrb[7].mxu1 }
 0x500   :  { %v4651_v55 = vpop.f32.mrb[8].mxu1 }
 0x501   :  { %v3907_v56 = vpop.f32.mrb[9].mxu1 }
 0x508   :  { %v3929_v58 = vpop.f32.mrb[10].mxu1 }
 0x509   :  { %v851_v59 = vpop.f32.mrb[11].mxu1  ;;  %v857_v0 = vadd.f32 %v3929_v58, %v3555_v57  ;;  %v1491_v58 = vld [vmem:[%s5058_s5 + $0x8] sm:$0xff] }
 0x50a   :  { %v852_v62 = vadd.f32 %v3555_v57, %v851_v59 }
 0x50c   :  { %3942 = vmatpush3.xpose.msk.msra.mxu1 %vm360_vm2, %v852_v62  ;;  %v1493_v62 = vld [vmem:[%s5058_s5 + $0x18] sm:$0xff] }
 0x50d   :  { %3946 = vmatprep.subr.mxu1 %v4408_v60 }
 0x50f   :  { %3944 = vmatmul.mubr.msk.f32.vlgmr.msra.gmra.mrb[12].mxu1 %vm360_vm2, %v764_v63  ;;  %v4226_v63 = vpack.c.bf16 %v1493_v62, %v1492_v61 }
 0x510   :  { %3947 = vmatpush3.xpose.msk.msra.mxu1 %vm360_vm2, %v857_v0  ;;  %3948 = vmatprep.mubr.msk.f32.mxu1 %vm4409_vm1, %v4408_v60 }
 0x511   :  { %3956 = vmatprep.subr.mxu1 %v4408_v60 }
 0x513   :  { %3949 = vmatmul.mubr.msk.f32.vlgmr.msra.gmra.mrb[14].mxu1 %vm360_vm2, %v769_v1 }
 0x514   :  { %3957 = vmatpush3.msra.mxu1 %v4608_v16  ;;  %3958 = vmatprep.mubr.msk.f32.mxu1 %vm4409_vm1, %v4408_v60 }
 0x5e2   :  { %v1020_v2 = vpop.f32.mrb[12].mxu1 }
 0x5e3   :  { %v1021_v3 = vadd.f32 %v1020_v2, %v4613_v19  ;;  %v3945_v4 = vpop.f32.mrb[13].mxu1 }
 0x5e5   :  { %v1100_v5 = vsel %vm513_vm3, %v1021_v3, -inf }
 0x5e6   :  { %1101 = vmax.xlane.f32.xlu0 %v1100_v5  ;;  %v1096_v6 = vpop.f32.mrb[14].mxu1 }
 0x5e7   :  { %v1097_v7 = vadd.f32 %v1096_v6, %v4619_v23  ;;  %v3950_v8 = vpop.f32.mrb[15].mxu1 }
 0x5e9   :  { %v1103_v9 = vsel %vm513_vm3, %v1097_v7, -inf }
 0x5ea   :  { %1104 = vmax.xlane.f32.xlu1 %v1103_v9 }
 0x673   :  { %v1102_v10 = vpop.xlane.xlu0 %1101 }
 0x674   :  { %v1106_v11 = vsub.f32 %v1021_v3, %v1102_v10 }
 0x676   :  { %v1108_v12 = vmul.f32 1.442695, %v1106_v11  ;;  %v3582_v11 = vld [vmem:[%s5057_s8 + $0x2] ss:$0 sm:$0xff] }
 0x677   :  { %v1105_v13 = vpop.xlane.xlu1 %1104 }
 0x678   :  { %4352 = vpow2.f32 %v1108_v12  ;;  %v1107_v14 = vsub.f32 %v1097_v7, %v1105_v13  ;;  %v3581_v7 = vld [vmem:[%s5057_s8 + $0x1] ss:$0 sm:$0xff] }
 0x67a   :  { %v1110_v15 = vmul.f32 1.442695, %v1107_v14 }
 0x67c   :  { %4354 = vpow2.f32 %v1110_v15 }
 0x682   :  { %v4353_v16 = vpop.eup %4352 }
 0x683   :  { %v1112_v17 = vsel %vm513_vm3, %v4353_v16, 0.0 }
 0x684   :  { %1113 = vadd.xlane.f32.xlu0 %v1112_v17  ;;  %v1601_v17 = vld [vmem:[%s5059_s6 + $0x8] sm:$0xff] }
 0x686   :  { %v4355_v18 = vpop.eup %4354 }
 0x687   :  { %v1115_v20 = vsel %vm513_vm3, %v4355_v18, 0.0 }
 0x688   :  { %1116 = vadd.xlane.f32.xlu1 %v1115_v20  ;;  %v1602_v20 = vld [vmem:[%s5059_s6 + $0x10] sm:$0xff] }
 0x711   :  { %v1114_v21 = vpop.xlane.xlu0 %1113 }
 0x712   :  { %4356 = vrcp.f32 %v1114_v21  ;;  %v1603_v21 = vld [vmem:[%s5059_s6 + $0x18] sm:$0xff] }
 0x715   :  { %v1117_v22 = vpop.xlane.xlu1 %1116 }
 0x716   :  { %4358 = vrcp.f32 %v1117_v22  ;;  %v4234_v22 = vpack.c.bf16 %v1603_v21, %v1602_v20  ;;  %v3613_v20 = vld [vmem:[%s5052_s3 + $0x158] sm:$0xff] }
 0x71c   :  { %v4357_v24 = vpop.eup %4356 }
 0x71d   :  { %v1120_v25 = vmul.f32 %v4357_v24, %v4353_v16  ;;  %v1600_v16 = vld [vmem:[%s5059_s6] sm:$0xff] }
 0x71e   :  { %v1604_v24 = vld [vmem:[%s5059_s6 + $0x20] sm:$0xff] }
 0x71f   :  { %3954 = vmatmul.mubr.msk.f32.vlgmr.msra.gmra.mrb[8].mxu0 %vm513_vm3, %v1120_v25  ;;  %v1605_v25 = vld [vmem:[%s5059_s6 + $0x28] sm:$0xff] }
 0x720   :  { %v4359_v26 = vpop.eup %4358  ;;  %4217 = vmatpush3.bf16.msra.mxu0 %v4214_v30  ;;  %v3583_v30 = vld [vmem:[%s5060_s9] ss:$0 sm:$0xff] }
 0x721   :  { %v1121_v27 = vmul.f32 %v4359_v26, %v4355_v18  ;;  %4219 = vmatprep.subr.bf16.mxu0 %v4218_v33  ;;  %v4230_v18 = vpack.c.bf16 %v1601_v17, %v1600_v16  ;;  %v4238_v26 = vpack.c.bf16 %v1605_v25, %v1604_v24  ;;  %v3597_v16 = vld [vmem:[%s5052_s3 + $0xd8] sm:$0xff]  ;;  %v3603_v24 = vld [vmem:[%s5052_s3 + $0x108] sm:$0xff] }
 0x723   :  { %3959 = vmatmul.mubr.msk.f32.vlgmr.msra.gmra.mrb[16].mxu1 %vm513_vm3, %v1121_v27  ;;  %v1606_v27 = vld [vmem:[%s5059_s6 + $0x30] sm:$0xff] }
 0x724   :  { %v4242_v29 = vpack.c.bf16 %v1607_v28, %v1606_v27 }
 0x7f2   :  { %v1191_v34 = vpop.f32.mrb[8].mxu0 }
 0x7f3   :  { %v3955_v35 = vpop.f32.mrb[9].mxu0  ;;  %3965 = vmatprep.mubr.msk.f32.mxu0 %vm360_vm2, %v1191_v34 }
 0x7f6   :  { %v1264_v36 = vpop.f32.mrb[16].mxu1 }
 0x7f7   :  { %v3960_v37 = vpop.f32.mrb[17].mxu1  ;;  %3966 = vmatmul.mubr.msk.f32.vlgmr.msra.gmra.mrb[10].mxu0 %vm360_vm2, %v1264_v36 }
 0x7f8   :  { %4221 = vmatpush3.bf16.msra.mxu0 %v4218_v33  ;;  %3972 = vmatprep.mubr.msk.f32.mxu0 %vm360_vm2, %v4649_v53 }
 0x7f9   :  { %4231 = vmatprep.subr.bf16.mxu0 %v4230_v18 }
 0x7ff   :  { %3973 = vmatmul.mubr.msk.f32.vlgmr.msra.gmra.mrb[10].mxu0 %vm360_vm2, %v4651_v55 }
 0x800   :  { %4233 = vmatpush3.bf16.msra.mxu0 %v4230_v18  ;;  %v3612_v18 = vld [vmem:[%s5052_s3 + $0x150] sm:$0xff] }
 0x801   :  { %4235 = vmatprep.subr.bf16.mxu0 %v4234_v22  ;;  %v4266_v21 = vpack.c.bf16 %v3613_v20, %v3612_v18  ;;  %v3634_v18 = vld [vmem:[%s5052_s3 + $0x120] sm:$0xff]  ;;  %v3635_v20 = vld [vmem:[%s5052_s3 + $0x128] sm:$0xff] }
 0x804   :  { %4237 = vmatpush3.bf16.msra.mxu0 %v4234_v22  ;;  %v3602_v22 = vld [vmem:[%s5052_s3 + $0x100] sm:$0xff] }
 0x805   :  { %4239 = vmatprep.subr.bf16.mxu0 %v4238_v26  ;;  %v4254_v25 = vpack.c.bf16 %v3603_v24, %v3602_v22 }
 0x808   :  { %4241 = vmatpush3.bf16.msra.mxu0 %v4238_v26 }
 0x809   :  { %4243 = vmatprep.subr.bf16.mxu0 %v4242_v29 }
 0x80c   :  { %4245 = vmatpush3.bf16.msra.mxu0 %v4242_v29 }
 0x8d2   :  { %v3974_v39 = vpop.f32.mrb[10].mxu0 }
 0x8d3   :  { %v1441_v40 = vadd.f32 %v3974_v39, %v3578_v38  ;;  %v1424_v42 = vpop.f32.mrb[11].mxu0 }
 0x8d4   :  { %v1440_v43 = vadd.f32 %v3578_v38, %v1424_v42 }
 0x8d5   :  { %v1443_v44 = vadd.f32 %v1441_v40, %v4533_v46 }
 0x8d6   :  { %v1442_v45 = vadd.f32 %v1440_v43, %v4521_v41  ;;  %v1490_v41 = vld [vmem:[%s5058_s5] sm:$0xff] }
 0x8d7   :  { %v1451_v47 = vsel %vm46_vm0, %v1443_v44, 0.0  ;;  %v4222_v59 = vpack.c.bf16 %v1491_v58, %v1490_v41 }
 0x8d8   :  { %1452 = vadd.xlane.f32.xlu1 %v1451_v47  ;;  %v1448_v48 = vsel %vm46_vm0, %v1442_v45, 0.0 }
 0x8d9   :  { %1449 = vadd.xlane.f32.xlu0 %v1448_v48  ;;  %4223 = vmatprep.subr.bf16.mxu1 %v4222_v59 }
 0x8da   :  { %4225 = vmatpush3.bf16.msra.mxu1 %v4222_v59 }
 0x8db   :  { %4227 = vmatprep.subr.bf16.mxu1 %v4226_v63 }
 0x8de   :  { %4229 = vmatpush3.bf16.msra.mxu1 %v4226_v63 }
 0x965   :  { %v1453_v49 = vpop.xlane.xlu1 %1452 }
 0x966   :  { %v1455_v50 = vmul.f32 0.03125, %v1453_v49  ;;  %v1450_v51 = vpop.xlane.xlu0 %1449 }
 0x967   :  { %v1454_v52 = vmul.f32 0.03125, %v1450_v51 }
 0x968   :  { %v1457_v53 = vsub.f32 %v1443_v44, %v1455_v50 }
 0x969   :  { %v1456_v54 = vsub.f32 %v1442_v45, %v1454_v52 }
 0x96a   :  { %v1459_v55 = vmul.f32 %v1457_v53, %v1457_v53 }
 0x96b   :  { %v1458_v56 = vmul.f32 %v1456_v54, %v1456_v54 }
 0x96c   :  { %v1463_v57 = vsel %vm46_vm0, %v1459_v55, 0.0  ;;  %v3587_v55 = vld [vmem:[%s5057_s8 + $0x3] ss:$0 sm:$0xff] }
 0x96d   :  { %1464 = vadd.xlane.f32.xlu1 %v1463_v57  ;;  %v1460_v46 = vsel %vm46_vm0, %v1458_v56, 0.0 }
 0x96e   :  { %1461 = vadd.xlane.f32.xlu0 %v1460_v46 }
 0x9fa   :  { %v1465_v0 = vpop.xlane.xlu1 %1464 }
 0x9fb   :  { %v1467_v1 = vmul.f32 0.03125, %v1465_v0  ;;  %v1462_v2 = vpop.xlane.xlu0 %1461 }
 0x9fc   :  { %v1466_v3 = vmul.f32 0.03125, %v1462_v2 }
 0x9fd   :  { %v1469_v4 = vadd.f32 1e-05, %v1467_v1 }
 0x9fe   :  { %v1468_v5 = vadd.f32 1e-05, %v1466_v3 }
 0x9ff   :  { %4360 = vrsqrt.f32 %v1469_v4 }
 0xa00   :  { %4362 = vrsqrt.f32 %v1468_v5 }
 0xa09   :  { %v4361_v6 = vpop.eup %4360 }
 0xa0a   :  { %v4363_v8 = vpop.eup %4362  ;;  %v1473_v9 = vmul.f32 %v4361_v6, %v1457_v53 }
 0xa0b   :  { %v1472_v10 = vmul.f32 %v4363_v8, %v1456_v54 }
 0xa0c   :  { %v1481_v12 = vmul.f32 %v3581_v7, %v1473_v9  ;;  %v3594_v9 = vld [vmem:[%s5052_s3 + $0xc0] sm:$0xff] }
 0xa0d   :  { %v1480_v13 = vmul.f32 %v3581_v7, %v1472_v10  ;;  %v3595_v10 = vld [vmem:[%s5052_s3 + $0xc8] sm:$0xff] }
 0xa0e   :  { %v1489_v15 = vadd.f32 %v3582_v11, %v1481_v12  ;;  %v3610_v12 = vld [vmem:[%s5052_s3 + $0x140] sm:$0xff] }
 0xa0f   :  { %v1488_v14 = vadd.f32 %v3582_v11, %v1480_v13  ;;  %v4246_v11 = vpack.c.bf16 %v3595_v10, %v3594_v9  ;;  %v3611_v13 = vld [vmem:[%s5052_s3 + $0x148] sm:$0xff] }
 0xa11   :  { %3983 = vmatprep.mubr.msk.f32.mxu1 %vm46_vm0, %v1488_v14  ;;  %4247 = vmatprep.subr.bf16.mxu1 %v4246_v11 }
 0xa12   :  { %3984 = vmatmul.mubr.msk.f32.vlgmr.msra.gmra.mrb[18].mxu1 %vm46_vm0, %v1489_v15 }
 0xa13   :  { %4249 = vmatpush3.bf16.msra.mxu1 %v4246_v11 }
 0xae5   :  { %v3985_v31 = vpop.f32.mrb[18].mxu1 }
 0xae6   :  { %v1579_v32 = vadd.f32 %v3985_v31, %v3583_v30  ;;  %v1573_v33 = vpop.f32.mrb[19].mxu1 }
 0xae7   :  { %v1574_v34 = vadd.f32 %v3583_v30, %v1573_v33  ;;  %v3592_v33 = vld [vmem:[%s5057_s8 + $0x4] ss:$0 sm:$0xff] }
 0xae8   :  { %v1583_v35 = vmul.f32 %v1579_v32, %v1579_v32 }
 0xae9   :  { %v1582_v36 = vmul.f32 %v1574_v34, %v1574_v34 }
 0xaea   :  { %v1585_v37 = vmul.f32 %v1583_v35, %v1579_v32 }
 0xaeb   :  { %v1584_v38 = vmul.f32 %v1582_v36, %v1574_v34 }
 0xaec   :  { %v1587_v39 = vmul.f32 0.044715, %v1585_v37  ;;  %v3593_v37 = vld [vmem:[%s5057_s8 + $0x5] ss:$0 sm:$0xff] }
 0xaed   :  { %v1586_v40 = vmul.f32 0.044715, %v1584_v38 }
 0xaee   :  { %v1589_v42 = vadd.f32 %v1587_v39, %v1579_v32 }
 0xaef   :  { %v1588_v43 = vadd.f32 %v1586_v40, %v1574_v34  ;;  %v3604_v40 = vld [vmem:[%s5052_s3 + $0x110] sm:$0xff] }
 0xaf0   :  { %v1591_v44 = vmul.f32 0.7978846, %v1589_v42  ;;  %v3605_v42 = vld [vmem:[%s5052_s3 + $0x118] sm:$0xff] }
 0xaf1   :  { %v1590_v45 = vmul.f32 0.7978846, %v1588_v43 }
 0xaf2   :  { %4364 = vtanh.f32 %v1591_v44 }
 0xaf3   :  { %4366 = vtanh.f32 %v1590_v45  ;;  %v4258_v45 = vpack.c.bf16 %v3605_v42, %v3604_v40 }
 0xafc   :  { %v4365_v47 = vpop.eup %4364 }
 0xafd   :  { %v4367_v48 = vpop.eup %4366  ;;  %v1595_v49 = vadd.f32 1.0, %v4365_v47  ;;  %v3615_v47 = vld [vmem:[%s5054_s7 + $0xa] ss:$0 sm:$0xff] }
 0xafe   :  { %v1594_v50 = vadd.f32 1.0, %v4367_v48 }
 0xaff   :  { %v1597_v51 = vmul.f32 0.5, %v1595_v49 }
 0xb00   :  { %v1596_v52 = vmul.f32 0.5, %v1594_v50 }
 0xb01   :  { %v1599_v54 = vmul.f32 %v1597_v51, %v1579_v32 }
 0xb02   :  { %v1598_v53 = vmul.f32 %v1596_v52, %v1574_v34 }
 0xb04   :  { %4002 = vmatprep.mubr.msk.f32.mxu0 %vm1616_vm4, %v1598_v53  ;;  %v3607_v53 = vld [vmem:[%s5054_s7 + $0x8] ss:$0 sm:$0xff] }
 0xb05   :  { %4003 = vmatmul.mubr.msk.f32.vlgmr.msra.gmra.mrb[12].mxu0 %vm1616_vm4, %v1599_v54 }
 0xbd8   :  { %v4004_v56 = vpop.f32.mrb[12].mxu0 }
 0xbd9   :  { %v1695_v57 = vadd.f32 %v4004_v56, %v3587_v55  ;;  %v1689_v46 = vpop.f32.mrb[13].mxu0  ;;  %v3599_v56 = vld [vmem:[%s5054_s7 + $0x6] ss:$0 sm:$0xff] }
 0xbda   :  { %v1690_v41 = vadd.f32 %v3587_v55, %v1689_v46 }
 0xbdb   :  { %v1699_v58 = vadd.f32 %v1695_v57, %v1489_v15  ;;  %v3596_v15 = vld [vmem:[%s5052_s3 + $0xd0] sm:$0xff] }
 0xbdc   :  { %v1698_v59 = vadd.f32 %v1690_v41, %v1488_v14  ;;  %v4262_v14 = vpack.c.bf16 %v3611_v13, %v3610_v12  ;;  %v4250_v17 = vpack.c.bf16 %v3597_v16, %v3596_v15  ;;  %v3626_v15 = vld [vmem:[%s5052_s3 + $0xe0] sm:$0xff]  ;;  %v3627_v16 = vld [vmem:[%s5052_s3 + $0xe8] sm:$0xff] }
 0xbdd   :  { %v1707_v61 = vsel %vm46_vm0, %v1699_v58, 0.0 }
 0xbde   :  { %1708 = vadd.xlane.f32.xlu1 %v1707_v61  ;;  %v1704_v62 = vsel %vm46_vm0, %v1698_v59, 0.0  ;;  %4263 = vmatprep.subr.bf16.mxu0 %v4262_v14 }
 0xbdf   :  { %1705 = vadd.xlane.f32.xlu0 %v1704_v62  ;;  %4265 = vmatpush3.bf16.msra.mxu0 %v4262_v14 }
 0xbe0   :  { %4251 = vmatprep.subr.bf16.mxu1 %v4250_v17  ;;  %4267 = vmatprep.subr.bf16.mxu0 %v4266_v21 }
 0xbe1   :  { %4253 = vmatpush3.bf16.msra.mxu1 %v4250_v17  ;;  %v4270_v17 = vpack.c.bf16 %v3627_v16, %v3626_v15 }
 0xbe2   :  { %4255 = vmatprep.subr.bf16.mxu1 %v4254_v25 }
 0xbe3   :  { %4269 = vmatpush3.bf16.msra.mxu0 %v4266_v21  ;;  %v4278_v21 = vpack.c.bf16 %v3635_v20, %v3634_v18 }
 0xbe4   :  { %4048 = vmatprep.subr.mxu0 %v4408_v60 }
 0xc6b   :  { %v1709_v63 = vpop.xlane.xlu1 %1708 }
 0xc6c   :  { %v1711_v0 = vmul.f32 0.03125, %v1709_v63  ;;  %v1706_v1 = vpop.xlane.xlu0 %1705 }
 0xc6d   :  { %v1710_v2 = vmul.f32 0.03125, %v1706_v1 }
 0xc6e   :  { %v1713_v3 = vsub.f32 %v1699_v58, %v1711_v0 }
 0xc6f   :  { %v1712_v4 = vsub.f32 %v1698_v59, %v1710_v2 }
 0xc70   :  { %v1715_v5 = vmul.f32 %v1713_v3, %v1713_v3 }
 0xc71   :  { %v1714_v6 = vmul.f32 %v1712_v4, %v1712_v4 }
 0xc72   :  { %v1719_v7 = vsel %vm46_vm0, %v1715_v5, 0.0 }
 0xc73   :  { %1720 = vadd.xlane.f32.xlu1 %v1719_v7  ;;  %v1716_v8 = vsel %vm46_vm0, %v1714_v6, 0.0 }
 0xc74   :  { %1717 = vadd.xlane.f32.xlu0 %v1716_v8 }
 0xd00   :  { %v1721_v26 = vpop.xlane.xlu1 %1720 }
 0xd01   :  { %v1723_v27 = vmul.f32 0.03125, %v1721_v26  ;;  %v1718_v28 = vpop.xlane.xlu0 %1717  ;;  %v3629_v26 = vld [vmem:[%s5052_s3 + $0xf8] sm:$0xff] }
 0xd02   :  { %v1722_v29 = vmul.f32 0.03125, %v1718_v28 }
 0xd03   :  { %v1725_v30 = vadd.f32 1e-05, %v1723_v27 }
 0xd04   :  { %v1724_v31 = vadd.f32 1e-05, %v1722_v29 }
 0xd05   :  { %4368 = vrsqrt.f32 %v1725_v30  ;;  %v3636_v30 = vld [vmem:[%s5052_s3 + $0x130] sm:$0xff] }
 0xd06   :  { %4370 = vrsqrt.f32 %v1724_v31  ;;  %v3637_v31 = vld [vmem:[%s5052_s3 + $0x138] sm:$0xff] }
 0xd0f   :  { %v4369_v32 = vpop.eup %4368 }
 0xd10   :  { %v4371_v34 = vpop.eup %4370  ;;  %v1729_v35 = vmul.f32 %v4369_v32, %v1713_v3  ;;  %v3642_v32 = vld [vmem:[%s5052_s3 + $0x160] sm:$0xff] }
 0xd11   :  { %v1728_v36 = vmul.f32 %v4371_v34, %v1712_v4 }
 0xd12   :  { %v1737_v38 = vmul.f32 %v3592_v33, %v1729_v35 }
 0xd13   :  { %v1736_v39 = vmul.f32 %v3592_v33, %v1728_v36  ;;  %v3643_v33 = vld [vmem:[%s5052_s3 + $0x168] sm:$0xff]  ;;  %v4282_v36 = vpack.c.bf16 %v3637_v31, %v3636_v30 }
 0xd14   :  { %v4808_v44 = vadd.f32 %v3593_v37, %v1737_v38  ;;  %v3644_v38 = vld [vmem:[%s5052_s3 + $0x170] sm:$0xff] }
 0xd15   :  { %v4806_v43 = vadd.f32 %v3593_v37, %v1736_v39  ;;  %v4286_v37 = vpack.c.bf16 %v3643_v33, %v3642_v32  ;;  %v3645_v39 = vld [vmem:[%s5052_s3 + $0x178] sm:$0xff]  ;;  %v3663_v32 = vld [vmem:[%s5057_s8 + $0x6] ss:$0 sm:$0xff] }
 0xd16   :  { %v4290_v40 = vpack.c.bf16 %v3645_v39, %v3644_v38 }
 0xd17   :  { %4013 = vmatprep.mubr.msk.f32.mxu1 %vm46_vm0, %v4806_v43  ;;  %4035 = vmatprep.mubr.msk.f32.mxu0 %vm46_vm0, %v4806_v43 }
 0xd18   :  { %4014 = vmatmul.mubr.msk.f32.vlgmr.msra.gmra.mrb[20].mxu1 %vm46_vm0, %v4808_v44  ;;  %4036 = vmatmul.mubr.msk.f32.vlgmr.msra.gmra.mrb[14].mxu0 %vm46_vm0, %v4808_v44 }
 0xd19   :  { %4257 = vmatpush3.bf16.msra.mxu1 %v4254_v25  ;;  %4024 = vmatprep.mubr.msk.f32.mxu1 %vm46_vm0, %v4806_v43  ;;  %v3628_v25 = vld [vmem:[%s5052_s3 + $0xf0] sm:$0xff] }
 0xd1a   :  { %4259 = vmatprep.subr.bf16.mxu1 %v4258_v45  ;;  %4050 = vmatprep.mubr.msk.f32.mxu0 %vm4409_vm1, %v4408_v60  ;;  %v4274_v29 = vpack.c.bf16 %v3629_v26, %v3628_v25  ;;  %v3624_v25 = vld [vmem:[%s5056_s4 + $0x20] sm:$0xff]  ;;  %v3625_v26 = vld [vmem:[%s5056_s4 + $0x28] sm:$0xff] }
 0xd1d   :  { %4261 = vmatpush3.bf16.msra.mxu1 %v4258_v45 }
 0xd1e   :  { %4038 = vmatprep.subr.mxu1 %v4408_v60 }
 0xd20   :  { %4025 = vmatmul.mubr.msk.f32.vlgmr.msra.gmra.mrb[22].mxu1 %vm46_vm0, %v4808_v44 }
 0xd21   :  { %4040 = vmatprep.mubr.msk.f32.mxu1 %vm4409_vm1, %v4408_v60 }
 0xdeb   :  { %v4015_v48 = vpop.f32.mrb[20].mxu1  ;;  %v4037_v49 = vpop.f32.mrb[14].mxu0 }
 0xdec   :  { %v1831_v50 = vpop.f32.mrb[21].mxu1  ;;  %v2007_v51 = vpop.f32.mrb[15].mxu0  ;;  %v1837_v58 = vadd.f32 %v4015_v48, %v3599_v56  ;;  %v2013_v59 = vadd.f32 %v4037_v49, %v3615_v47 }
 0xded   :  { %v2008_v52 = vadd.f32 %v3615_v47, %v2007_v51  ;;  %v1832_v46 = vadd.f32 %v3599_v56, %v1831_v50  ;;  %v3639_v51 = vld [vmem:[%s5054_s7 + $0x9] ss:$0 sm:$0xff]  ;;  %v3647_v56 = vld [vmem:[%s5054_s7 + $0xb] ss:$0 sm:$0xff] }
 0xdef   :  { %4049 = vmatpush3.msra.mxu0 %v2008_v52 }
 0xdf0   :  { %4271 = vmatprep.subr.bf16.mxu0 %v4270_v17 }
 0xdf3   :  { %v4026_v54 = vpop.f32.mrb[22].mxu1 }
 0xdf4   :  { %v1919_v55 = vpop.f32.mrb[23].mxu1  ;;  %v1925_v41 = vadd.f32 %v4026_v54, %v3607_v53  ;;  %v3631_v54 = vld [vmem:[%s5054_s7 + $0x7] ss:$0 sm:$0xff] }
 0xdf5   :  { %v1920_v57 = vadd.f32 %v3607_v53, %v1919_v55 }
 0xdf7   :  { %4039 = vmatpush3.xpose.msk.msra.mxu1 %vm360_vm2, %v1920_v57 }
 0xdf8   :  { %4043 = vmatprep.subr.mxu1 %v4408_v60 }
 0xdfa   :  { %4041 = vmatmul.mubr.msk.f32.vlgmr.msra.gmra.mrb[24].mxu1 %vm360_vm2, %v1832_v46 }
 0xdfb   :  { %4044 = vmatpush3.xpose.msk.msra.mxu1 %vm360_vm2, %v1925_v41  ;;  %4045 = vmatprep.mubr.msk.f32.mxu1 %vm4409_vm1, %v4408_v60 }
 0xdfc   :  { %4053 = vmatprep.subr.mxu1 %v4408_v60 }
 0xdfe   :  { %4046 = vmatmul.mubr.msk.f32.vlgmr.msra.gmra.mrb[26].mxu1 %vm360_vm2, %v1837_v58 }
 0xdff   :  { %4054 = vmatpush3.msra.mxu1 %v2013_v59  ;;  %4055 = vmatprep.mubr.msk.f32.mxu1 %vm4409_vm1, %v4408_v60 }
 0xe00   :  { %4279 = vmatprep.subr.bf16.mxu1 %v4278_v21 }
 0xecd   :  { %v2088_v61 = vpop.f32.mrb[24].mxu1 }
 0xece   :  { %v2089_v62 = vadd.f32 %v2088_v61, %v4613_v19  ;;  %v4042_v63 = vpop.f32.mrb[25].mxu1 }
 0xed0   :  { %v2168_v0 = vsel %vm513_vm3, %v2089_v62, -inf }
 0xed1   :  { %2169 = vmax.xlane.f32.xlu1 %v2168_v0  ;;  %v2164_v1 = vpop.f32.mrb[26].mxu1 }
 0xed2   :  { %v2165_v2 = vadd.f32 %v2164_v1, %v4619_v23  ;;  %v4047_v3 = vpop.f32.mrb[27].mxu1 }
 0xed4   :  { %v2171_v4 = vsel %vm513_vm3, %v2165_v2, -inf }
 0xed5   :  { %2172 = vmax.xlane.f32.xlu0 %v2171_v4 }
 0xf5e   :  { %v2170_v5 = vpop.xlane.xlu1 %2169 }
 0xf5f   :  { %v2174_v6 = vsub.f32 %v2089_v62, %v2170_v5 }
 0xf61   :  { %v2176_v7 = vmul.f32 1.442695, %v2174_v6 }
 0xf62   :  { %v2173_v8 = vpop.xlane.xlu0 %2172 }
 0xf63   :  { %4372 = vpow2.f32 %v2176_v7  ;;  %v2175_v9 = vsub.f32 %v2165_v2, %v2173_v8 }
 0xf65   :  { %v2178_v10 = vmul.f32 1.442695, %v2175_v9 }
 0xf67   :  { %4374 = vpow2.f32 %v2178_v10 }
 0xf6d   :  { %v4373_v11 = vpop.eup %4372 }
 0xf6e   :  { %v2180_v12 = vsel %vm513_vm3, %v4373_v11, 0.0 }
 0xf6f   :  { %2181 = vadd.xlane.f32.xlu1 %v2180_v12 }
 0xf71   :  { %v4375_v13 = vpop.eup %4374 }
 0xf72   :  { %v2183_v14 = vsel %vm513_vm3, %v4375_v13, 0.0 }
 0xf73   :  { %2184 = vadd.xlane.f32.xlu0 %v2183_v14 }
 0xffc   :  { %v2182_v22 = vpop.xlane.xlu1 %2181 }
 0xffd   :  { %4376 = vrcp.f32 %v2182_v22  ;;  %v3657_v22 = vld [vmem:[%s5056_s4 + $0x38] sm:$0xff] }
0x1000   :  { %v2185_v24 = vpop.xlane.xlu0 %2184 }
0x1001   :  { %4378 = vrcp.f32 %v2185_v24 }
0x1007   :  { %v4377_v27 = vpop.eup %4376 }
0x1008   :  { %v2188_v28 = vmul.f32 %v4377_v27, %v4373_v11  ;;  %v4298_v27 = vpack.c.bf16 %v3625_v26, %v3624_v25 }
0x100a   :  { %4051 = vmatmul.mubr.msk.f32.vlgmr.msra.gmra.mrb[16].mxu0 %vm513_vm3, %v2188_v28 }
0x100b   :  { %v4379_v34 = vpop.eup %4378  ;;  %4273 = vmatpush3.bf16.msra.mxu0 %v4270_v17  ;;  %4066 = vmatprep.mubr.msk.f32.mxu0 %vm46_vm0, %v4806_v43 }
0x100c   :  { %v2189_v35 = vmul.f32 %v4379_v34, %v4375_v13  ;;  %4275 = vmatprep.subr.bf16.mxu0 %v4274_v29 }
0x100e   :  { %4056 = vmatmul.mubr.msk.f32.vlgmr.msra.gmra.mrb[28].mxu1 %vm513_vm3, %v2189_v35 }
0x100f   :  { %4277 = vmatpush3.bf16.msra.mxu0 %v4274_v29  ;;  %4281 = vmatpush3.bf16.msra.mxu1 %v4278_v21  ;;  %v3656_v21 = vld [vmem:[%s5056_s4 + $0x30] sm:$0xff] }
0x1010   :  { %4077 = vmatprep.mubr.msk.f32.mxu1 %vm46_vm0, %v4806_v43  ;;  %4283 = vmatprep.subr.bf16.mxu1 %v4282_v36  ;;  %v4294_v24 = vpack.c.bf16 %v3657_v22, %v3656_v21 }
0x1011   :  { %4287 = vmatprep.subr.bf16.mxu0 %v4286_v37 }
0x1012   :  { %4067 = vmatmul.mubr.msk.f32.vlgmr.msra.gmra.mrb[18].mxu0 %vm46_vm0, %v4808_v44 }
0x1013   :  { %4285 = vmatpush3.bf16.msra.mxu1 %v4282_v36  ;;  %4289 = vmatpush3.bf16.msra.mxu0 %v4286_v37 }
0x1014   :  { %4088 = vmatprep.mubr.msk.f32.mxu0 %vm46_vm0, %v4806_v43  ;;  %4291 = vmatprep.subr.bf16.mxu0 %v4290_v40 }
0x1015   :  { %4091 = vmatprep.subr.mxu1 %v4408_v60 }
0x1016   :  { %4078 = vmatmul.mubr.msk.f32.vlgmr.msra.gmra.mrb[30].mxu1 %vm46_vm0, %v4808_v44 }
0x1017   :  { %4293 = vmatpush3.bf16.msra.mxu0 %v4290_v40  ;;  %4093 = vmatprep.mubr.msk.f32.mxu1 %vm4409_vm1, %v4408_v60 }
0x1018   :  { %4101 = vmatprep.subr.mxu0 %v4408_v60 }
0x101a   :  { %4089 = vmatmul.mubr.msk.f32.vlgmr.msra.gmra.mrb[20].mxu0 %vm46_vm0, %v4808_v44 }
0x101b   :  { %4103 = vmatprep.mubr.msk.f32.mxu0 %vm4409_vm1, %v4408_v60 }
0x10dd   :  { %v4908_v42 = vpop.f32.mrb[16].mxu0 }
0x10de   :  { %v4052_v45 = vpop.f32.mrb[17].mxu0 }
0x10e1   :  { %v4910_v47 = vpop.f32.mrb[28].mxu1 }
0x10e2   :  { %v4057_v48 = vpop.f32.mrb[29].mxu1 }
0x10e5   :  { %v4068_v49 = vpop.f32.mrb[18].mxu0 }
0x10e6   :  { %v2418_v50 = vpop.f32.mrb[19].mxu0  ;;  %v2424_v61 = vadd.f32 %v4068_v49, %v3631_v54 }
0x10e7   :  { %v2419_v46 = vadd.f32 %v3631_v54, %v2418_v50  ;;  %v3669_v54 = vld [vmem:[%s5058_s5 + $0x28] sm:$0xff] }
0x10e9   :  { %v4079_v52 = vpop.f32.mrb[30].mxu1 }
0x10ea   :  { %v2506_v53 = vpop.f32.mrb[31].mxu1  ;;  %v2512_v58 = vadd.f32 %v4079_v52, %v3639_v51 }
0x10eb   :  { %v2507_v55 = vadd.f32 %v3639_v51, %v2506_v53 }
0x10ed   :  { %v4090_v57 = vpop.f32.mrb[20].mxu0  ;;  %4092 = vmatpush3.xpose.msk.msra.mxu1 %vm360_vm2, %v2507_v55 }
0x10ee   :  { %v2594_v41 = vpop.f32.mrb[21].mxu0  ;;  %4096 = vmatprep.subr.mxu1 %v4408_v60  ;;  %v2600_v62 = vadd.f32 %v4090_v57, %v3647_v56  ;;  %v3671_v57 = vld [vmem:[%s5058_s5 + $0x38] sm:$0xff] }
0x10ef   :  { %v2595_v59 = vadd.f32 %v3647_v56, %v2594_v41  ;;  %v3670_v56 = vld [vmem:[%s5058_s5 + $0x30] sm:$0xff] }
0x10f0   :  { %4094 = vmatmul.mubr.msk.f32.vlgmr.msra.gmra.mrb[32].mxu1 %vm360_vm2, %v2419_v46  ;;  %v4306_v46 = vpack.c.bf16 %v3671_v57, %v3670_v56 }
0x10f1   :  { %4097 = vmatpush3.xpose.msk.msra.mxu1 %vm360_vm2, %v2512_v58  ;;  %4102 = vmatpush3.msra.mxu0 %v2595_v59 }
0x10f2   :  { %4098 = vmatprep.mubr.msk.f32.mxu1 %vm4409_vm1, %v4408_v60  ;;  %4106 = vmatprep.subr.mxu1 %v4408_v60 }
0x10f3   :  { %4295 = vmatprep.subr.bf16.mxu0 %v4294_v24 }
0x10f4   :  { %4099 = vmatmul.mubr.msk.f32.vlgmr.msra.gmra.mrb[34].mxu1 %vm360_vm2, %v2424_v61 }
0x10f5   :  { %4107 = vmatpush3.msra.mxu1 %v2600_v62  ;;  %4108 = vmatprep.mubr.msk.f32.mxu1 %vm4409_vm1, %v4408_v60 }
0x11c3   :  { %v2675_v63 = vpop.f32.mrb[32].mxu1 }
0x11c4   :  { %v2676_v0 = vadd.f32 %v2675_v63, %v4613_v19  ;;  %v4095_v1 = vpop.f32.mrb[33].mxu1 }
0x11c5   :  { %v3666_v1 = vld [vmem:[%s5057_s8 + $0x7] ss:$0 sm:$0xff] }
0x11c6   :  { %v2755_v2 = vsel %vm513_vm3, %v2676_v0, -inf }
0x11c7   :  { %2756 = vmax.xlane.f32.xlu0 %v2755_v2  ;;  %v2751_v3 = vpop.f32.mrb[34].mxu1 }
0x11c8   :  { %v2752_v4 = vadd.f32 %v2751_v3, %v4619_v23  ;;  %v4100_v5 = vpop.f32.mrb[35].mxu1 }
0x11c9   :  { %v3667_v5 = vld [vmem:[%s5057_s8 + $0x8] ss:$0 sm:$0xff] }
0x11ca   :  { %v2758_v6 = vsel %vm513_vm3, %v2752_v4, -inf }
0x11cb   :  { %2759 = vmax.xlane.f32.xlu1 %v2758_v6 }
0x1254   :  { %v2757_v7 = vpop.xlane.xlu0 %2756 }
0x1255   :  { %v2761_v8 = vsub.f32 %v2676_v0, %v2757_v7 }
0x1257   :  { %v2763_v9 = vmul.f32 1.442695, %v2761_v8 }
0x1258   :  { %v2760_v10 = vpop.xlane.xlu1 %2759 }
0x1259   :  { %4380 = vpow2.f32 %v2763_v9  ;;  %v2762_v60 = vsub.f32 %v2752_v4, %v2760_v10  ;;  %v3676_v10 = vld [vmem:[%s5059_s6 + $0x40] sm:$0xff] }
0x125b   :  { %v2765_v11 = vmul.f32 1.442695, %v2762_v60  ;;  %v3677_v60 = vld [vmem:[%s5059_s6 + $0x48] sm:$0xff] }
0x125d   :  { %4382 = vpow2.f32 %v2765_v11  ;;  %v4310_v11 = vpack.c.bf16 %v3677_v60, %v3676_v10 }
0x1263   :  { %v4381_v19 = vpop.eup %4380 }
0x1264   :  { %v2767_v12 = vsel %vm513_vm3, %v4381_v19, 0.0 }
0x1265   :  { %2768 = vadd.xlane.f32.xlu0 %v2767_v12  ;;  %v3679_v12 = vld [vmem:[%s5059_s6 + $0x58] sm:$0xff] }
0x1267   :  { %v4383_v13 = vpop.eup %4382 }
0x1268   :  { %v2770_v14 = vsel %vm513_vm3, %v4383_v13, 0.0 }
0x1269   :  { %2771 = vadd.xlane.f32.xlu1 %v2770_v14  ;;  %v3680_v14 = vld [vmem:[%s5059_s6 + $0x60] sm:$0xff] }
0x12f2   :  { %v2769_v23 = vpop.xlane.xlu0 %2768 }
0x12f3   :  { %4384 = vrcp.f32 %v2769_v23  ;;  %v3681_v23 = vld [vmem:[%s5059_s6 + $0x68] sm:$0xff] }
0x12f6   :  { %v2772_v15 = vpop.xlane.xlu1 %2771 }
0x12f7   :  { %4386 = vrcp.f32 %v2772_v15  ;;  %v4318_v15 = vpack.c.bf16 %v3681_v23, %v3680_v14  ;;  %v3691_v23 = vld [vmem:[%s5057_s8 + $0xb] ss:$0 sm:$0xff] }
0x12fd   :  { %v4385_v16 = vpop.eup %4384 }
0x12fe   :  { %v2775_v17 = vmul.f32 %v4385_v16, %v4381_v19  ;;  %v3678_v19 = vld [vmem:[%s5059_s6 + $0x50] sm:$0xff] }
0x12ff   :  { %v3682_v16 = vld [vmem:[%s5059_s6 + $0x70] sm:$0xff] }
0x1300   :  { %4104 = vmatmul.mubr.msk.f32.vlgmr.msra.gmra.mrb[22].mxu0 %vm513_vm3, %v2775_v17  ;;  %v3683_v17 = vld [vmem:[%s5059_s6 + $0x78] sm:$0xff] }
0x1301   :  { %v4387_v18 = vpop.eup %4386  ;;  %4297 = vmatpush3.bf16.msra.mxu0 %v4294_v24 }
0x1302   :  { %v2776_v20 = vmul.f32 %v4387_v18, %v4383_v13  ;;  %4299 = vmatprep.subr.bf16.mxu0 %v4298_v27  ;;  %v4314_v13 = vpack.c.bf16 %v3679_v12, %v3678_v19  ;;  %v4322_v18 = vpack.c.bf16 %v3683_v17, %v3682_v16  ;;  %v3690_v19 = vld [vmem:[%s5057_s8 + $0xa] ss:$0 sm:$0xff] }
0x1304   :  { %4109 = vmatmul.mubr.msk.f32.vlgmr.msra.gmra.mrb[36].mxu1 %vm513_vm3, %v2776_v20  ;;  %v3673_v20 = vld [vmem:[%s5060_s9 + $0x1] ss:$0 sm:$0xff] }
0x13d3   :  { %v2846_v28 = vpop.f32.mrb[22].mxu0 }
0x13d4   :  { %v4105_v29 = vpop.f32.mrb[23].mxu0  ;;  %4115 = vmatprep.mubr.msk.f32.mxu0 %vm360_vm2, %v2846_v28 }
0x13d7   :  { %v2919_v30 = vpop.f32.mrb[36].mxu1 }
0x13d8   :  { %v4110_v31 = vpop.f32.mrb[37].mxu1  ;;  %4116 = vmatmul.mubr.msk.f32.vlgmr.msra.gmra.mrb[24].mxu0 %vm360_vm2, %v2919_v30 }
0x13d9   :  { %4301 = vmatpush3.bf16.msra.mxu0 %v4298_v27  ;;  %4122 = vmatprep.mubr.msk.f32.mxu0 %vm360_vm2, %v4908_v42 }
0x13da   :  { %4311 = vmatprep.subr.bf16.mxu0 %v4310_v11 }
0x13e0   :  { %4123 = vmatmul.mubr.msk.f32.vlgmr.msra.gmra.mrb[24].mxu0 %vm360_vm2, %v4910_v47 }
0x13e1   :  { %4313 = vmatpush3.bf16.msra.mxu0 %v4310_v11 }
0x13e2   :  { %4315 = vmatprep.subr.bf16.mxu0 %v4314_v13 }
0x13e5   :  { %4317 = vmatpush3.bf16.msra.mxu0 %v4314_v13 }
0x13e6   :  { %4319 = vmatprep.subr.bf16.mxu0 %v4318_v15 }
0x13e9   :  { %4321 = vmatpush3.bf16.msra.mxu0 %v4318_v15 }
0x13ea   :  { %4323 = vmatprep.subr.bf16.mxu0 %v4322_v18 }
0x13ed   :  { %4325 = vmatpush3.bf16.msra.mxu0 %v4322_v18 }
0x14b3   :  { %v4124_v33 = vpop.f32.mrb[24].mxu0 }
0x14b4   :  { %v3097_v34 = vadd.f32 %v4124_v33, %v3663_v32  ;;  %v3079_v35 = vpop.f32.mrb[25].mxu0 }
0x14b5   :  { %v3096_v36 = vadd.f32 %v3663_v32, %v3079_v35 }
0x14b6   :  { %v3099_v37 = vadd.f32 %v3097_v34, %v4808_v44 }
0x14b7   :  { %v3098_v38 = vadd.f32 %v3096_v36, %v4806_v43  ;;  %v3668_v43 = vld [vmem:[%s5058_s5 + $0x20] sm:$0xff] }
0x14b8   :  { %v3107_v39 = vsel %vm46_vm0, %v3099_v37, 0.0  ;;  %v4302_v55 = vpack.c.bf16 %v3669_v54, %v3668_v43 }
0x14b9   :  { %3108 = vadd.xlane.f32.xlu1 %v3107_v39  ;;  %v3104_v40 = vsel %vm46_vm0, %v3098_v38, 0.0 }
0x14ba   :  { %3105 = vadd.xlane.f32.xlu0 %v3104_v40  ;;  %4303 = vmatprep.subr.bf16.mxu1 %v4302_v55 }
0x14bb   :  { %4305 = vmatpush3.bf16.msra.mxu1 %v4302_v55 }
0x14bc   :  { %4307 = vmatprep.subr.bf16.mxu1 %v4306_v46 }
0x14bf   :  { %4309 = vmatpush3.bf16.msra.mxu1 %v4306_v46 }
0x1546   :  { %v3109_v42 = vpop.xlane.xlu1 %3108 }
0x1547   :  { %v3111_v45 = vmul.f32 0.03125, %v3109_v42  ;;  %v3106_v47 = vpop.xlane.xlu0 %3105 }
0x1548   :  { %v3110_v48 = vmul.f32 0.03125, %v3106_v47 }
0x1549   :  { %v3113_v49 = vsub.f32 %v3099_v37, %v3111_v45 }
0x154a   :  { %v3112_v50 = vsub.f32 %v3098_v38, %v3110_v48  ;;  %v3685_v48 = vld [vmem:[%s5057_s8 + $0x9] ss:$0 sm:$0xff] }
0x154b   :  { %v3115_v51 = vmul.f32 %v3113_v49, %v3113_v49 }
0x154c   :  { %v3114_v52 = vmul.f32 %v3112_v50, %v3112_v50 }
0x154d   :  { %v3119_v53 = vsel %vm46_vm0, %v3115_v51, 0.0 }
0x154e   :  { %3120 = vadd.xlane.f32.xlu1 %v3119_v53  ;;  %v3116_v44 = vsel %vm46_vm0, %v3114_v52, 0.0 }
0x154f   :  { %3117 = vadd.xlane.f32.xlu0 %v3116_v44 }
0x15db   :  { %v3121_v41 = vpop.xlane.xlu1 %3120 }
0x15dc   :  { %v3123_v58 = vmul.f32 0.03125, %v3121_v41  ;;  %v3118_v59 = vpop.xlane.xlu0 %3117 }
0x15dd   :  { %v3122_v61 = vmul.f32 0.03125, %v3118_v59 }
0x15de   :  { %v3125_v62 = vadd.f32 1e-05, %v3123_v58 }
0x15df   :  { %v3124_v63 = vadd.f32 1e-05, %v3122_v61 }
0x15e0   :  { %4388 = vrsqrt.f32 %v3125_v62 }
0x15e1   :  { %4390 = vrsqrt.f32 %v3124_v63 }
0x15ea   :  { %v4389_v0 = vpop.eup %4388 }
0x15eb   :  { %v4391_v2 = vpop.eup %4390  ;;  %v3129_v3 = vmul.f32 %v4389_v0, %v3113_v49  ;;  %v3404_v0 = vld [vmem:[%s5061_s10] sm:$0xff] }
0x15ec   :  { %v3128_v4 = vmul.f32 %v4391_v2, %v3112_v50 }
0x15ed   :  { %v3137_v6 = vmul.f32 %v3666_v1, %v3129_v3  ;;  %v3406_v3 = vld [vmem:[%s5061_s10 + $0x10] sm:$0xff] }
0x15ee   :  { %v3136_v7 = vmul.f32 %v3666_v1, %v3128_v4  ;;  %v3405_v1 = vld [vmem:[%s5061_s10 + $0x8] sm:$0xff]  ;;  %v3407_v4 = vld [vmem:[%s5061_s10 + $0x18] sm:$0xff] }
0x15ef   :  { %v3145_v9 = vadd.f32 %v3667_v5, %v3137_v6  ;;  %v4326_v2 = vpack.c.bf16 %v3405_v1, %v3404_v0 }
0x15f0   :  { %v3144_v8 = vadd.f32 %v3667_v5, %v3136_v7  ;;  %v4330_v5 = vpack.c.bf16 %v3407_v4, %v3406_v3 }
0x15f1   :  { %4327 = vmatprep.subr.bf16.mxu1 %v4326_v2 }
0x15f2   :  { %4133 = vmatprep.mubr.msk.f32.mxu1 %vm46_vm0, %v3144_v8 }
0x15f3   :  { %4134 = vmatmul.mubr.msk.f32.vlgmr.msra.gmra.mrb[38].mxu1 %vm46_vm0, %v3145_v9 }
0x15f4   :  { %4329 = vmatpush3.bf16.msra.mxu1 %v4326_v2 }
0x15f5   :  { %4331 = vmatprep.subr.bf16.mxu1 %v4330_v5 }
0x15f8   :  { %4333 = vmatpush3.bf16.msra.mxu1 %v4330_v5 }
0x16c6   :  { %v4135_v21 = vpop.f32.mrb[38].mxu1 }
0x16c7   :  { %v3237_v22 = vadd.f32 %v4135_v21, %v3673_v20  ;;  %v3231_v24 = vpop.f32.mrb[39].mxu1 }
0x16c8   :  { %v3232_v25 = vadd.f32 %v3673_v20, %v3231_v24  ;;  %v3692_v20 = vld [vmem:[%s5062_s11] ss:$0 sm:$0xff] }
0x16c9   :  { %v3241_v26 = vmul.f32 %v3237_v22, %v3237_v22 }
0x16ca   :  { %v3240_v27 = vmul.f32 %v3232_v25, %v3232_v25 }
0x16cb   :  { %v3243_v28 = vmul.f32 %v3241_v26, %v3237_v22 }
0x16cc   :  { %v3242_v29 = vmul.f32 %v3240_v27, %v3232_v25 }
0x16cd   :  { %v3245_v30 = vmul.f32 0.044715, %v3243_v28 }
0x16ce   :  { %v3244_v31 = vmul.f32 0.044715, %v3242_v29 }
0x16cf   :  { %v3247_v32 = vadd.f32 %v3245_v30, %v3237_v22 }
0x16d0   :  { %v3246_v33 = vadd.f32 %v3244_v31, %v3232_v25 }
0x16d1   :  { %v3249_v34 = vmul.f32 0.7978846, %v3247_v32 }
0x16d2   :  { %v3248_v35 = vmul.f32 0.7978846, %v3246_v33 }
0x16d3   :  { %4392 = vtanh.f32 %v3249_v34 }
0x16d4   :  { %4394 = vtanh.f32 %v3248_v35 }
0x16dd   :  { %v4393_v36 = vpop.eup %4392 }
0x16de   :  { %v4395_v37 = vpop.eup %4394  ;;  %v3253_v38 = vadd.f32 1.0, %v4393_v36 }
0x16df   :  { %v3252_v39 = vadd.f32 1.0, %v4395_v37 }
0x16e0   :  { %v3255_v40 = vmul.f32 0.5, %v3253_v38 }
0x16e1   :  { %v3254_v42 = vmul.f32 0.5, %v3252_v39 }
0x16e2   :  { %v3257_v47 = vmul.f32 %v3255_v40, %v3237_v22 }
0x16e3   :  { %v3256_v45 = vmul.f32 %v3254_v42, %v3232_v25 }
0x16e5   :  { %4152 = vmatprep.mubr.msk.f32.mxu0 %vm1616_vm4, %v3256_v45 }
0x16e6   :  { %4153 = vmatmul.mubr.msk.f32.vlgmr.msra.gmra.mrb[26].mxu0 %vm1616_vm4, %v3257_v47 }
0x17b9   :  { %v4154_v49 = vpop.f32.mrb[26].mxu0 }
0x17ba   :  { %v3353_v50 = vadd.f32 %v4154_v49, %v3685_v48  ;;  %v3347_v51 = vpop.f32.mrb[27].mxu0 }
0x17bb   :  { %v3348_v52 = vadd.f32 %v3685_v48, %v3347_v51 }
0x17bc   :  { %v3357_v53 = vadd.f32 %v3353_v50, %v3145_v9 }
0x17bd   :  { %v3356_v44 = vadd.f32 %v3348_v52, %v3144_v8 }
0x17be   :  { %v3365_v43 = vsel %vm46_vm0, %v3357_v53, 0.0 }
0x17bf   :  { %3366 = vadd.xlane.f32.xlu1 %v3365_v43  ;;  %v3362_v54 = vsel %vm46_vm0, %v3356_v44, 0.0 }
0x17c0   :  { %3363 = vadd.xlane.f32.xlu0 %v3362_v54 }
0x184c   :  { %v3367_v55 = vpop.xlane.xlu1 %3366 }
0x184d   :  { %v3369_v56 = vmul.f32 0.03125, %v3367_v55  ;;  %v3364_v57 = vpop.xlane.xlu0 %3363 }
0x184e   :  { %v3368_v46 = vmul.f32 0.03125, %v3364_v57 }
0x184f   :  { %v3371_v41 = vsub.f32 %v3357_v53, %v3369_v56 }
0x1850   :  { %v3370_v58 = vsub.f32 %v3356_v44, %v3368_v46 }
0x1851   :  { %v3373_v59 = vmul.f32 %v3371_v41, %v3371_v41 }
0x1852   :  { %v3372_v61 = vmul.f32 %v3370_v58, %v3370_v58 }
0x1853   :  { %v3377_v62 = vsel %vm46_vm0, %v3373_v59, 0.0 }
0x1854   :  { %3378 = vadd.xlane.f32.xlu1 %v3377_v62  ;;  %v3374_v63 = vsel %vm46_vm0, %v3372_v61, 0.0 }
0x1855   :  { %3375 = vadd.xlane.f32.xlu0 %v3374_v63 }
0x18e1   :  { %v3379_v6 = vpop.xlane.xlu1 %3378 }
0x18e2   :  { %v3381_v7 = vmul.f32 0.03125, %v3379_v6  ;;  %v3376_v8 = vpop.xlane.xlu0 %3375 }
0x18e3   :  { %v3380_v9 = vmul.f32 0.03125, %v3376_v8 }
0x18e4   :  { %v3383_v10 = vadd.f32 1e-05, %v3381_v7 }
0x18e5   :  { %v3382_v60 = vadd.f32 1e-05, %v3380_v9 }
0x18e6   :  { %4396 = vrsqrt.f32 %v3383_v10 }
0x18e7   :  { %4398 = vrsqrt.f32 %v3382_v60 }
0x18f0   :  { %v4397_v11 = vpop.eup %4396 }
0x18f1   :  { %v4399_v12 = vpop.eup %4398  ;;  %v3387_v13 = vmul.f32 %v4397_v11, %v3371_v41 }
0x18f2   :  { %v3386_v14 = vmul.f32 %v4399_v12, %v3370_v58 }
0x18f3   :  { %v3395_v15 = vmul.f32 %v3690_v19, %v3387_v13 }
0x18f4   :  { %v3394_v16 = vmul.f32 %v3690_v19, %v3386_v14 }
0x18f5   :  { %v3403_v18 = vadd.f32 %v3691_v23, %v3395_v15 }
0x18f6   :  { %v3402_v17 = vadd.f32 %v3691_v23, %v3394_v16 }
0x18f8   :  { %4163 = vmatprep.mubr.msk.f32.mxu1 %vm46_vm0, %v3402_v17 }
0x18f9   :  { %4164 = vmatmul.mubr.msk.f32.vlgmr.msra.gmra.mrb[40].mxu1 %vm46_vm0, %v3403_v18 }
0x19cc   :  { %v4165_v21 = vpop.f32.mrb[40].mxu1 }
0x19cd   :  { %v3493_v22 = vadd.f32 %v4165_v21, %v3692_v20  ;;  %v3487_v24 = vpop.f32.mrb[41].mxu1 }
0x19ce   :  { %v3488_v25 = vadd.f32 %v3692_v20, %v3487_v24 }
0x19cf   :  { %v3696_v26 = vmul.f32 -1.442695, %v3493_v22 }
0x19d0   :  { %v3695_v27 = vmul.f32 -1.442695, %v3488_v25 }
0x19d1   :  { %4400 = vpow2.f32 %v3696_v26 }
0x19d2   :  { %4402 = vpow2.f32 %v3695_v27 }
0x19db   :  { %v4401_v28 = vpop.eup %4400 }
0x19dc   :  { %v4403_v29 = vpop.eup %4402  ;;  %v3503_v30 = vadd.f32 1.0, %v4401_v28 }
0x19dd   :  { %v3502_v31 = vadd.f32 1.0, %v4403_v29 }
0x19de   :  { %4404 = vrcp.f32 %v3503_v30 }
0x19df   :  { %4406 = vrcp.f32 %v3502_v31 }
0x19e8   :  { %v4405_v32 = vpop.eup %4404 }
0x19e9   :  { %v4407_v33 = vpop.eup %4406  ;;  %3509 = vst [vmem:[%s5063_s12 + $0x8] sm:$0xff] %v4405_v32 }
0x19ea   :  { %3508 = vst [vmem:[%s5063_s12] sm:$0xff] %v4407_v33 }

</bundles_post_ra>
